<compile_context>
chip_gen: v7x
topology: tpu7x:2x2x1
jax: 0.10.0
libtpu: 0.0.40
codegen_flags: <defaults>
</compile_context>

<pallas_src>
import functools
import math

import jax
import jax.numpy as jnp
from jax import lax
from jax.experimental import pallas as pl
from jax.experimental.pallas import tpu as pltpu

EPS = 1e-6            # PyTorch module uses nn.LayerNorm(embed_dim, eps=1e-06)
LANE = 128            # pad N/D/TH/CH to multiples of this
_SQRT_2_OVER_PI = 0.7978845608028654


def _round_up(v, m):
    return ((v + m - 1) // m) * m


def _probe_single_buffer_weights():
    """One-time feature probe: does this jax accept BlockSpec(pipeline_mode=...)?"""
    if not hasattr(pl, "Buffered"):
        return False
    try:
        pl.BlockSpec((8, 128), lambda i: (0, 0), pipeline_mode=pl.Buffered(1))
        return True
    except TypeError:
        return False


_SINGLE_BUFFER_WEIGHTS = _probe_single_buffer_weights()


def _gelu_tanh(x):
    # tanh-approximate GELU: tanh goes to the EUP slot, unlike erf which
    # expands to a long VPU polynomial. Intentional parity change vs
    # torch.nn.GELU() exact erf (|diff| < ~3e-3 per element).
    return 0.5 * x * (1.0 + jnp.tanh(_SQRT_2_OVER_PI * (x + 0.044715 * (x * x * x))))


def _gelu_exact(x):
    # exact erf formulation, used only by the pure-JAX parity reference.
    return 0.5 * x * (1.0 + jax.lax.erf(x * (1.0 / math.sqrt(2.0))))


def _layernorm_1pass(x, gamma, beta, inv_d):
    # One-pass LN: E[x] and E[x^2] in one sweep (halves cross-lane reductions).
    # inv_d = 1/real_D so zero-padded channel columns don't perturb the stats.
    s1 = jnp.sum(x, axis=-1, keepdims=True)
    s2 = jnp.sum(x * x, axis=-1, keepdims=True)
    mu = s1 * inv_d
    var = s2 * inv_d - mu * mu
    return (x - mu) * jax.lax.rsqrt(var + EPS) * gamma + beta


def _mixer_block_kernel(
    x_ref,                                   # (N, D) f32 (leading B squeezed)
    g1_ref, b1_ref,                          # (1, D) LayerNorm1 (zero-padded)
    wt1t_ref, bt1_ref,                       # (TH, N) bf16, (TH, 1) f32  (= wt1.T)
    wt2t_ref, bt2_ref,                       # (N, TH) bf16, (N, 1) f32   (= wt2.T)
    g2_ref, b2_ref,                          # (1, D) LayerNorm2 (zero-padded)
    wc1_ref, bc1_ref,                        # (D, CH) bf16, (1, CH) f32
    wc2_ref, bc2_ref,                        # (CH, D) bf16, (1, D) f32
    o_ref,                                   # (N, D)
    xmid_ref,                                # (N, D) f32 VMEM scratch
    *, d_real, d_pad, n_chunk,
):
    f32, bf16 = jnp.float32, jnp.bfloat16
    inv_d = 1.0 / float(d_real)

    x = x_ref[...].astype(f32)                            # (N, D), lane dim = D

    # ---- token-mixing branch (transpose-free: token weights pre-transposed,
    #      so both matmuls keep D on the lane axis and the XLU stays idle).
    xn = _layernorm_1pass(x, g1_ref[0], b1_ref[0], inv_d)
    h = jnp.dot(wt1t_ref[...], xn.astype(bf16),
                preferred_element_type=f32) + bt1_ref[...]     # (TH, D)
    h = _gelu_tanh(h)
    t = jnp.dot(wt2t_ref[...], h.astype(bf16),
                preferred_element_type=f32) + bt2_ref[...]     # (N, D)
    if d_pad != d_real:
        # The token biases broadcast across D, so re-zero the padded D lanes
        # to keep the LayerNorm-2 statistics exact.
        dmask = lax.broadcasted_iota(jnp.int32, (1, d_pad), 1) < d_real
        t = jnp.where(dmask, t, 0.0)
    xmid_ref[...] = x + t                                 # token residual (f32)

    # ---- channel-mixing branch: LN2 -> fc1 -> GELU -> fc2, chunked over N
    #      so the (chunk, CH) f32 GELU intermediate stays bounded in VMEM.
    def channel_chunk(start):
        xc = xmid_ref[pl.ds(start, n_chunk), :]
        xn2 = _layernorm_1pass(xc, g2_ref[0], b2_ref[0], inv_d)
        hc = jnp.dot(xn2.astype(bf16), wc1_ref[...],
                     preferred_element_type=f32) + bc1_ref[0]  # (chunk, CH)
        hc = _gelu_tanh(hc)
        cc = jnp.dot(hc.astype(bf16), wc2_ref[...],
                     preferred_element_type=f32) + bc2_ref[0]  # (chunk, D)
        o_ref[pl.ds(start, n_chunk), :] = (xc + cc).astype(o_ref.dtype)

    n_chunks = xmid_ref.shape[0] // n_chunk

    def body(ci, carry):
        channel_chunk(pl.multiple_of(ci * n_chunk, n_chunk))
        return carry

    lax.fori_loop(0, n_chunks, body, 0, unroll=n_chunks <= 2)


def _vmem_limit_bytes(Np, Dp, THp, CHp, n_chunk, single_buf):
    """Advisory VMEM budget computed from real block/weight/intermediate sizes,
    capped at 48 MiB so v7x (64 MiB physical) keeps headroom for Mosaic scratch."""
    wbuf = 1 if single_buf else 2
    io_blocks = 2 * 2 * Np * Dp * 4                          # x + o, double-buffered f32
    weights = wbuf * 2 * (2 * THp * Np + 2 * Dp * CHp)       # bf16 matmul weights
    biases = wbuf * 4 * (THp + Np + CHp + 5 * Dp)            # f32 biases + LN params
    scratch = Np * Dp * 4                                    # xmid
    live = 4 * (3 * Np * Dp + 2 * THp * Dp
                + 2 * n_chunk * CHp + 2 * n_chunk * Dp)      # live f32 intermediates
    est = io_blocks + weights + biases + scratch + live
    return int(min(48 << 20, max(32 << 20, int(est * 1.3) + (4 << 20))))


def _build_call(B, Np, Dp, THp, CHp, d_real, out_dtype):
    n_chunk = 256 if Np % 256 == 0 else 128

    def weight_spec(shape):
        index_map = lambda b, _n=len(shape): (0,) * _n
        if _SINGLE_BUFFER_WEIGHTS:
            # Grid-invariant operand: constant index_map, never re-fetched;
            # single buffering halves its VMEM reservation.
            return pl.BlockSpec(shape, index_map, pipeline_mode=pl.Buffered(1))
        return pl.BlockSpec(shape, index_map)

    flops = 4 * B * Np * Dp * (THp + CHp)                    # 4 matmuls
    transcendentals = B * (THp * Dp + Np * CHp)              # one tanh per GELU elem
    bytes_accessed = (
        2 * B * Np * Dp * 4                                  # x in + out (f32)
        + 2 * (2 * Np * THp + 2 * Dp * CHp)                  # bf16 weights
        + (THp + Np + CHp + 5 * Dp) * 4                      # biases + LN params
    )

    kernel = functools.partial(
        _mixer_block_kernel, d_real=d_real, d_pad=Dp, n_chunk=n_chunk)

    return pl.pallas_call(
        kernel,
        out_shape=jax.ShapeDtypeStruct((B, Np, Dp), out_dtype),
        grid_spec=pltpu.PrefetchScalarGridSpec(
            num_scalar_prefetch=0,
            grid=(B,),
            in_specs=[
                pl.BlockSpec((None, Np, Dp), lambda b: (b, 0, 0)),   # x
                weight_spec((1, Dp)), weight_spec((1, Dp)),          # ln1 gamma/beta
                weight_spec((THp, Np)), weight_spec((THp, 1)),       # token fc1 (pre-T)
                weight_spec((Np, THp)), weight_spec((Np, 1)),        # token fc2 (pre-T)
                weight_spec((1, Dp)), weight_spec((1, Dp)),          # ln2 gamma/beta
                weight_spec((Dp, CHp)), weight_spec((1, CHp)),       # channel fc1
                weight_spec((CHp, Dp)), weight_spec((1, Dp)),        # channel fc2
            ],
            out_specs=pl.BlockSpec((None, Np, Dp), lambda b: (b, 0, 0)),
            scratch_shapes=[pltpu.VMEM((Np, Dp), jnp.float32)],
        ),
        compiler_params=pltpu.CompilerParams(
            dimension_semantics=("parallel",),
            vmem_limit_bytes=_vmem_limit_bytes(
                Np, Dp, THp, CHp, n_chunk, _SINGLE_BUFFER_WEIGHTS),
        ),
        cost_estimate=pl.CostEstimate(
            flops=flops,
            transcendentals=transcendentals,
            bytes_accessed=bytes_accessed,
        ),
    )


def prepare_params(params, num_patches):
    """One-time prep: pad to LANE multiples, pre-transpose token weights and
    cast all matmul weights to bf16 (done once, not per forward call)."""
    N = num_patches
    D = params["g1"].shape[-1]
    TH = params["wt1"].shape[1]
    CH = params["wc1"].shape[1]
    Np, Dp, THp, CHp = (_round_up(v, LANE) for v in (N, D, TH, CH))
    f32, bf16 = jnp.float32, jnp.bfloat16

    def pad2(a, r, c):
        return jnp.pad(a, ((0, r - a.shape[0]), (0, c - a.shape[1])))

    return {
        "dims": (N, D, TH, CH, Np, Dp, THp, CHp),
        # NOTE: LN gamma is zero-padded (not one-padded) so padded D lanes -> 0.
        "g1": pad2(params["g1"].astype(f32), 1, Dp),
        "b1": pad2(params["b1"].astype(f32), 1, Dp),
        "g2": pad2(params["g2"].astype(f32), 1, Dp),
        "b2": pad2(params["b2"].astype(f32), 1, Dp),
        # token-mixing weights pre-transposed so the kernel never transposes
        "wt1t": pad2(params["wt1"].T, THp, Np).astype(bf16),
        "bt1": pad2(params["bt1"].reshape(TH, 1).astype(f32), THp, 1),
        "wt2t": pad2(params["wt2"].T, Np, THp).astype(bf16),
        "bt2": pad2(params["bt2"].reshape(N, 1).astype(f32), Np, 1),
        "wc1": pad2(params["wc1"], Dp, CHp).astype(bf16),
        "bc1": pad2(params["bc1"].astype(f32), 1, CHp),
        "wc2": pad2(params["wc2"], CHp, Dp).astype(bf16),
        "bc2": pad2(params["bc2"].astype(f32), 1, Dp),
    }


def mixer_block(x, prep):
    """x: (B, N, D) float32. prep: output of prepare_params()."""
    B, N, D = x.shape
    Nr, Dr, TH, CH, Np, Dp, THp, CHp = prep["dims"]
    assert (N, D) == (Nr, Dr), "input shape does not match prepared params"

    xp = x if (Np == N and Dp == D) else jnp.pad(
        x, ((0, 0), (0, Np - N), (0, Dp - D)))

    call = _build_call(B, Np, Dp, THp, CHp, d_real=D, out_dtype=x.dtype)
    out = call(xp,
               prep["g1"], prep["b1"],
               prep["wt1t"], prep["bt1"],
               prep["wt2t"], prep["bt2"],
               prep["g2"], prep["b2"],
               prep["wc1"], prep["bc1"],
               prep["wc2"], prep["bc2"])
    if Np != N or Dp != D:
        out = out[:, :N, :D]
    return out


def init_params(key, embed_dim, num_patches, mlp_ratio=(0.5, 4.0)):
    TH = int(mlp_ratio[0] * embed_dim)
    CH = int(mlp_ratio[1] * embed_dim)
    ks = jax.random.split(key, 8)
    scale = 0.02
    return {
        # LayerNorms: torch default init gamma=1, beta=0
        "g1": jnp.ones((1, embed_dim), jnp.float32),
        "b1": jnp.zeros((1, embed_dim), jnp.float32),
        "g2": jnp.ones((1, embed_dim), jnp.float32),
        "b2": jnp.zeros((1, embed_dim), jnp.float32),
        # token-mixing MLP (acts over num_patches), stored in (in, out) layout
        "wt1": scale * jax.random.normal(ks[0], (num_patches, TH), jnp.float32),
        "bt1": scale * jax.random.normal(ks[1], (1, TH), jnp.float32),
        "wt2": scale * jax.random.normal(ks[2], (TH, num_patches), jnp.float32),
        "bt2": scale * jax.random.normal(ks[3], (1, num_patches), jnp.float32),
        # channel-mixing MLP (acts over embed_dim)
        "wc1": scale * jax.random.normal(ks[4], (embed_dim, CH), jnp.float32),
        "bc1": scale * jax.random.normal(ks[5], (1, CH), jnp.float32),
        "wc2": scale * jax.random.normal(ks[6], (CH, embed_dim), jnp.float32),
        "bc2": scale * jax.random.normal(ks[7], (1, embed_dim), jnp.float32),
    }


def mixer_block_ref(x, p):
    """Pure-JAX f32 reference mirroring the PyTorch forward (dropout p=0,
    exact-erf GELU as in torch.nn.GELU())."""
    def ln(v, g, b):
        mu = jnp.mean(v, -1, keepdims=True)
        var = jnp.mean(jnp.square(v - mu), -1, keepdims=True)
        return (v - mu) * jax.lax.rsqrt(var + EPS) * g[0] + b[0]

    res = x
    y = ln(x, p["g1"], p["b1"])
    yt = jnp.swapaxes(y, 1, 2)                          # (B, D, N)
    h = _gelu_exact(yt @ p["wt1"] + p["bt1"][0])
    yt = h @ p["wt2"] + p["bt2"][0]
    x = jnp.swapaxes(yt, 1, 2) + res
    res = x
    y = ln(x, p["g2"], p["b2"])
    h = _gelu_exact(y @ p["wc1"] + p["bc1"][0])
    y = h @ p["wc2"] + p["bc2"][0]
    return y + res


if __name__ == "__main__":
    B, N, D = 2, 16, 32       # batch, num_patches, embed_dim (small synthetic)
    key = jax.random.PRNGKey(0)
    kx, kp = jax.random.split(key)
    x = jax.random.normal(kx, (B, N, D), jnp.float32)
    params = init_params(kp, embed_dim=D, num_patches=N, mlp_ratio=(0.5, 4.0))
    prep = prepare_params(params, num_patches=N)   # pad/transpose/bf16 once

    out = jax.block_until_ready(mixer_block(x, prep))
    ref = mixer_block_ref(x, params)

    assert out.shape == (B, N, D)
    # Tolerance covers bf16 matmul operands and the tanh-approximate GELU
    # (accumulation, LN and residuals are f32).
    assert jnp.allclose(out, ref, atol=2e-2, rtol=2e-2), "mismatch vs reference"

    print("KERNEL_OK")
</pallas_src>

<mosaic_0001>
module attributes {stable_mosaic.version = 11 : i64} {
  func.func @_mixer_block_kernel(%arg0: i32, %arg1: memref<1x128x128xf32, #tpu.memory_space<vmem>>, %arg2: memref<1x128xf32, #tpu.memory_space<vmem>>, %arg3: memref<1x128xf32, #tpu.memory_space<vmem>>, %arg4: memref<128x128xbf16, #tpu.memory_space<vmem>>, %arg5: memref<128x1xf32, #tpu.memory_space<vmem>>, %arg6: memref<128x128xbf16, #tpu.memory_space<vmem>>, %arg7: memref<128x1xf32, #tpu.memory_space<vmem>>, %arg8: memref<1x128xf32, #tpu.memory_space<vmem>>, %arg9: memref<1x128xf32, #tpu.memory_space<vmem>>, %arg10: memref<128x128xbf16, #tpu.memory_space<vmem>>, %arg11: memref<1x128xf32, #tpu.memory_space<vmem>>, %arg12: memref<128x128xbf16, #tpu.memory_space<vmem>>, %arg13: memref<1x128xf32, #tpu.memory_space<vmem>>, %arg14: memref<1x128x128xf32, #tpu.memory_space<vmem>>, %arg15: memref<128x128xf32, #tpu.memory_space<vmem>>) attributes {dimension_semantics = [#tpu.dimension_semantics<parallel>], iteration_bounds = array<i64: 2>, scalar_prefetch = 0 : i64, scratch_operands = 1 : i64, tpu.core_type = #tpu.core_type<tc>, window_params = [{transform_indices = @transform_0, window_bounds = array<i64: 1, 128, 128>}, {pipeline_mode = #tpu.pipeline_mode<synchronous>, transform_indices = @transform_1, window_bounds = array<i64: 1, 128>}, {pipeline_mode = #tpu.pipeline_mode<synchronous>, transform_indices = @transform_2, window_bounds = array<i64: 1, 128>}, {pipeline_mode = #tpu.pipeline_mode<synchronous>, transform_indices = @transform_3, window_bounds = array<i64: 128, 128>}, {pipeline_mode = #tpu.pipeline_mode<synchronous>, transform_indices = @transform_4, window_bounds = array<i64: 128, 1>}, {pipeline_mode = #tpu.pipeline_mode<synchronous>, transform_indices = @transform_5, window_bounds = array<i64: 128, 128>}, {pipeline_mode = #tpu.pipeline_mode<synchronous>, transform_indices = @transform_6, window_bounds = array<i64: 128, 1>}, {pipeline_mode = #tpu.pipeline_mode<synchronous>, transform_indices = @transform_7, window_bounds = array<i64: 1, 128>}, {pipeline_mode = #tpu.pipeline_mode<synchronous>, transform_indices = @transform_8, window_bounds = array<i64: 1, 128>}, {pipeline_mode = #tpu.pipeline_mode<synchronous>, transform_indices = @transform_9, window_bounds = array<i64: 128, 128>}, {pipeline_mode = #tpu.pipeline_mode<synchronous>, transform_indices = @transform_10, window_bounds = array<i64: 1, 128>}, {pipeline_mode = #tpu.pipeline_mode<synchronous>, transform_indices = @transform_11, window_bounds = array<i64: 128, 128>}, {pipeline_mode = #tpu.pipeline_mode<synchronous>, transform_indices = @transform_12, window_bounds = array<i64: 1, 128>}, {transform_indices = @transform_13, window_bounds = array<i64: 1, 128, 128>}]} {
    %c0 = arith.constant 0 : index
    %c0_0 = arith.constant 0 : index
    %c0_1 = arith.constant 0 : index
    %0 = vector.load %arg1[%c0, %c0_0, %c0_1] : memref<1x128x128xf32, #tpu.memory_space<vmem>>, vector<1x128x128xf32>
    %1 = vector.shape_cast %0 : vector<1x128x128xf32> to vector<128x128xf32>
    %c0_2 = arith.constant 0 : index
    %c0_3 = arith.constant 0 : index
    %2 = vector.load %arg2[%c0_2, %c0_3] : memref<1x128xf32, #tpu.memory_space<vmem>>, vector<1x128xf32>
    %3 = vector.shape_cast %2 : vector<1x128xf32> to vector<128xf32>
    %c0_4 = arith.constant 0 : index
    %c0_5 = arith.constant 0 : index
    %4 = vector.load %arg3[%c0_4, %c0_5] : memref<1x128xf32, #tpu.memory_space<vmem>>, vector<1x128xf32>
    %5 = vector.shape_cast %4 : vector<1x128xf32> to vector<128xf32>
    %cst = arith.constant dense<0.000000e+00> : vector<128xf32>
    %6 = vector.multi_reduction <add>, %1, %cst [1] : vector<128x128xf32> to vector<128xf32>
    %7 = vector.shape_cast %6 : vector<128xf32> to vector<128x1xf32>
    %8 = arith.mulf %1, %1 : vector<128x128xf32>
    %cst_6 = arith.constant dense<0.000000e+00> : vector<128xf32>
    %9 = vector.multi_reduction <add>, %8, %cst_6 [1] : vector<128x128xf32> to vector<128xf32>
    %10 = vector.shape_cast %9 : vector<128xf32> to vector<128x1xf32>
    %cst_7 = arith.constant 3.125000e-02 : f32
    %11 = vector.broadcast %cst_7 : f32 to vector<128x1xf32>
    %12 = arith.mulf %7, %11 : vector<128x1xf32>
    %cst_8 = arith.constant 3.125000e-02 : f32
    %13 = vector.broadcast %cst_8 : f32 to vector<128x1xf32>
    %14 = arith.mulf %10, %13 : vector<128x1xf32>
    %15 = arith.mulf %12, %12 : vector<128x1xf32>
    %16 = arith.subf %14, %15 : vector<128x1xf32>
    %17 = vector.broadcast %12 : vector<128x1xf32> to vector<128x128xf32>
    %18 = arith.subf %1, %17 : vector<128x128xf32>
    %cst_9 = arith.constant 9.99999997E-7 : f32
    %19 = vector.broadcast %cst_9 : f32 to vector<128x1xf32>
    %20 = arith.addf %16, %19 : vector<128x1xf32>
    %21 = math.rsqrt %20 : vector<128x1xf32>
    %22 = vector.broadcast %21 : vector<128x1xf32> to vector<128x128xf32>
    %23 = arith.mulf %18, %22 : vector<128x128xf32>
    %24 = vector.shape_cast %3 : vector<128xf32> to vector<1x128xf32>
    %25 = vector.broadcast %24 : vector<1x128xf32> to vector<128x128xf32>
    %26 = arith.mulf %23, %25 : vector<128x128xf32>
    %27 = vector.shape_cast %5 : vector<128xf32> to vector<1x128xf32>
    %28 = vector.broadcast %27 : vector<1x128xf32> to vector<128x128xf32>
    %29 = arith.addf %26, %28 : vector<128x128xf32>
    %c0_10 = arith.constant 0 : index
    %c0_11 = arith.constant 0 : index
    %30 = vector.load %arg4[%c0_10, %c0_11] : memref<128x128xbf16, #tpu.memory_space<vmem>>, vector<128x128xbf16>
    %31 = arith.truncf %29 : vector<128x128xf32> to vector<128x128xbf16>
    %cst_12 = arith.constant dense<0.000000e+00> : vector<128x128xf32>
    %32 = tpu.matmul %30, %31, %cst_12 {dimension_numbers = #tpu.dot_dimension_numbers<[1], [0], [0], [1], [0, 0, 1, 1], [], []>} : vector<128x128xbf16>, vector<128x128xbf16>, vector<128x128xf32> -> vector<128x128xf32>
    %c0_13 = arith.constant 0 : index
    %c0_14 = arith.constant 0 : index
    %33 = vector.load %arg5[%c0_13, %c0_14] : memref<128x1xf32, #tpu.memory_space<vmem>>, vector<128x1xf32>
    %34 = vector.broadcast %33 : vector<128x1xf32> to vector<128x128xf32>
    %35 = arith.addf %32, %34 : vector<128x128xf32>
    %cst_15 = arith.constant 5.000000e-01 : f32
    %36 = vector.broadcast %cst_15 : f32 to vector<128x128xf32>
    %37 = arith.mulf %36, %35 : vector<128x128xf32>
    %38 = arith.mulf %35, %35 : vector<128x128xf32>
    %39 = arith.mulf %38, %35 : vector<128x128xf32>
    %cst_16 = arith.constant 4.471500e-02 : f32
    %40 = vector.broadcast %cst_16 : f32 to vector<128x128xf32>
    %41 = arith.mulf %40, %39 : vector<128x128xf32>
    %42 = arith.addf %35, %41 : vector<128x128xf32>
    %cst_17 = arith.constant 0.797884583 : f32
    %43 = vector.broadcast %cst_17 : f32 to vector<128x128xf32>
    %44 = arith.mulf %43, %42 : vector<128x128xf32>
    %45 = math.tanh %44 : vector<128x128xf32>
    %cst_18 = arith.constant 1.000000e+00 : f32
    %46 = vector.broadcast %cst_18 : f32 to vector<128x128xf32>
    %47 = arith.addf %46, %45 : vector<128x128xf32>
    %48 = arith.mulf %37, %47 : vector<128x128xf32>
    %c0_19 = arith.constant 0 : index
    %c0_20 = arith.constant 0 : index
    %49 = vector.load %arg6[%c0_19, %c0_20] : memref<128x128xbf16, #tpu.memory_space<vmem>>, vector<128x128xbf16>
    %50 = arith.truncf %48 : vector<128x128xf32> to vector<128x128xbf16>
    %cst_21 = arith.constant dense<0.000000e+00> : vector<128x128xf32>
    %51 = tpu.matmul %49, %50, %cst_21 {dimension_numbers = #tpu.dot_dimension_numbers<[1], [0], [0], [1], [0, 0, 1, 1], [], []>} : vector<128x128xbf16>, vector<128x128xbf16>, vector<128x128xf32> -> vector<128x128xf32>
    %c0_22 = arith.constant 0 : index
    %c0_23 = arith.constant 0 : index
    %52 = vector.load %arg7[%c0_22, %c0_23] : memref<128x1xf32, #tpu.memory_space<vmem>>, vector<128x1xf32>
    %53 = vector.broadcast %52 : vector<128x1xf32> to vector<128x128xf32>
    %54 = arith.addf %51, %53 : vector<128x128xf32>
    %55 = tpu.iota {dimensions = array<i32: 1>} : vector<1x128xi32>
    %c32_i32 = arith.constant 32 : i32
    %56 = vector.broadcast %c32_i32 : i32 to vector<1x128xi32>
    %57 = arith.cmpi slt, %55, %56 : vector<1x128xi32>
    %cst_24 = arith.constant 0.000000e+00 : f32
    %58 = vector.shape_cast %57 : vector<1x128xi1> to vector<1x128xi1>
    %59 = vector.broadcast %58 : vector<1x128xi1> to vector<128x128xi1>
    %60 = vector.broadcast %cst_24 : f32 to vector<128x128xf32>
    %61 = arith.select %59, %54, %60 : vector<128x128xi1>, vector<128x128xf32>
    %62 = arith.addf %1, %61 : vector<128x128xf32>
    %c0_25 = arith.constant 0 : index
    %c0_26 = arith.constant 0 : index
    %63 = vector.load %arg15[%c0_25, %c0_26] : memref<128x128xf32, #tpu.memory_space<vmem>>, vector<128x128xf32>
    tpu.vector_store %arg15[%c0_25, %c0_26], %62 {strides = array<i32>} : memref<128x128xf32, #tpu.memory_space<vmem>>, vector<128x128xf32>,
    %c0_i32 = arith.constant 0 : i32
    %c128_i32 = arith.constant 128 : i32
    %64 = arith.muli %c0_i32, %c128_i32 : i32
    %65 = tpu.assume_multiple %64, 128 : i32
    %66 = arith.index_cast %65 : i32 to index
    %c0_27 = arith.constant 0 : index
    %67 = vector.load %arg15[%66, %c0_27] : memref<128x128xf32, #tpu.memory_space<vmem>>, vector<128x128xf32>
    %c0_28 = arith.constant 0 : index
    %c0_29 = arith.constant 0 : index
    %68 = vector.load %arg8[%c0_28, %c0_29] : memref<1x128xf32, #tpu.memory_space<vmem>>, vector<1x128xf32>
    %69 = vector.shape_cast %68 : vector<1x128xf32> to vector<128xf32>
    %c0_30 = arith.constant 0 : index
    %c0_31 = arith.constant 0 : index
    %70 = vector.load %arg9[%c0_30, %c0_31] : memref<1x128xf32, #tpu.memory_space<vmem>>, vector<1x128xf32>
    %71 = vector.shape_cast %70 : vector<1x128xf32> to vector<128xf32>
    %cst_32 = arith.constant dense<0.000000e+00> : vector<128xf32>
    %72 = vector.multi_reduction <add>, %67, %cst_32 [1] : vector<128x128xf32> to vector<128xf32>
    %73 = vector.shape_cast %72 : vector<128xf32> to vector<128x1xf32>
    %74 = arith.mulf %67, %67 : vector<128x128xf32>
    %cst_33 = arith.constant dense<0.000000e+00> : vector<128xf32>
    %75 = vector.multi_reduction <add>, %74, %cst_33 [1] : vector<128x128xf32> to vector<128xf32>
    %76 = vector.shape_cast %75 : vector<128xf32> to vector<128x1xf32>
    %cst_34 = arith.constant 3.125000e-02 : f32
    %77 = vector.broadcast %cst_34 : f32 to vector<128x1xf32>
    %78 = arith.mulf %73, %77 : vector<128x1xf32>
    %cst_35 = arith.constant 3.125000e-02 : f32
    %79 = vector.broadcast %cst_35 : f32 to vector<128x1xf32>
    %80 = arith.mulf %76, %79 : vector<128x1xf32>
    %81 = arith.mulf %78, %78 : vector<128x1xf32>
    %82 = arith.subf %80, %81 : vector<128x1xf32>
    %83 = vector.broadcast %78 : vector<128x1xf32> to vector<128x128xf32>
    %84 = arith.subf %67, %83 : vector<128x128xf32>
    %cst_36 = arith.constant 9.99999997E-7 : f32
    %85 = vector.broadcast %cst_36 : f32 to vector<128x1xf32>
    %86 = arith.addf %82, %85 : vector<128x1xf32>
    %87 = math.rsqrt %86 : vector<128x1xf32>
    %88 = vector.broadcast %87 : vector<128x1xf32> to vector<128x128xf32>
    %89 = arith.mulf %84, %88 : vector<128x128xf32>
    %90 = vector.shape_cast %69 : vector<128xf32> to vector<1x128xf32>
    %91 = vector.broadcast %90 : vector<1x128xf32> to vector<128x128xf32>
    %92 = arith.mulf %89, %91 : vector<128x128xf32>
    %93 = vector.shape_cast %71 : vector<128xf32> to vector<1x128xf32>
    %94 = vector.broadcast %93 : vector<1x128xf32> to vector<128x128xf32>
    %95 = arith.addf %92, %94 : vector<128x128xf32>
    %96 = arith.truncf %95 : vector<128x128xf32> to vector<128x128xbf16>
    %c0_37 = arith.constant 0 : index
    %c0_38 = arith.constant 0 : index
    %97 = vector.load %arg10[%c0_37, %c0_38] : memref<128x128xbf16, #tpu.memory_space<vmem>>, vector<128x128xbf16>
    %cst_39 = arith.constant dense<0.000000e+00> : vector<128x128xf32>
    %98 = tpu.matmul %96, %97, %cst_39 {dimension_numbers = #tpu.dot_dimension_numbers<[1], [0], [0], [1], [0, 0, 1, 1], [], []>} : vector<128x128xbf16>, vector<128x128xbf16>, vector<128x128xf32> -> vector<128x128xf32>
    %c0_40 = arith.constant 0 : index
    %c0_41 = arith.constant 0 : index
    %99 = vector.load %arg11[%c0_40, %c0_41] : memref<1x128xf32, #tpu.memory_space<vmem>>, vector<1x128xf32>
    %100 = vector.shape_cast %99 : vector<1x128xf32> to vector<128xf32>
    %101 = vector.shape_cast %100 : vector<128xf32> to vector<1x128xf32>
    %102 = vector.broadcast %101 : vector<1x128xf32> to vector<128x128xf32>
    %103 = arith.addf %98, %102 : vector<128x128xf32>
    %cst_42 = arith.constant 5.000000e-01 : f32
    %104 = vector.broadcast %cst_42 : f32 to vector<128x128xf32>
    %105 = arith.mulf %104, %103 : vector<128x128xf32>
    %106 = arith.mulf %103, %103 : vector<128x128xf32>
    %107 = arith.mulf %106, %103 : vector<128x128xf32>
    %cst_43 = arith.constant 4.471500e-02 : f32
    %108 = vector.broadcast %cst_43 : f32 to vector<128x128xf32>
    %109 = arith.mulf %108, %107 : vector<128x128xf32>
    %110 = arith.addf %103, %109 : vector<128x128xf32>
    %cst_44 = arith.constant 0.797884583 : f32
    %111 = vector.broadcast %cst_44 : f32 to vector<128x128xf32>
    %112 = arith.mulf %111, %110 : vector<128x128xf32>
    %113 = math.tanh %112 : vector<128x128xf32>
    %cst_45 = arith.constant 1.000000e+00 : f32
    %114 = vector.broadcast %cst_45 : f32 to vector<128x128xf32>
    %115 = arith.addf %114, %113 : vector<128x128xf32>
    %116 = arith.mulf %105, %115 : vector<128x128xf32>
    %117 = arith.truncf %116 : vector<128x128xf32> to vector<128x128xbf16>
    %c0_46 = arith.constant 0 : index
    %c0_47 = arith.constant 0 : index
    %118 = vector.load %arg12[%c0_46, %c0_47] : memref<128x128xbf16, #tpu.memory_space<vmem>>, vector<128x128xbf16>
    %cst_48 = arith.constant dense<0.000000e+00> : vector<128x128xf32>
    %119 = tpu.matmul %117, %118, %cst_48 {dimension_numbers = #tpu.dot_dimension_numbers<[1], [0], [0], [1], [0, 0, 1, 1], [], []>} : vector<128x128xbf16>, vector<128x128xbf16>, vector<128x128xf32> -> vector<128x128xf32>
    %c0_49 = arith.constant 0 : index
    %c0_50 = arith.constant 0 : index
    %120 = vector.load %arg13[%c0_49, %c0_50] : memref<1x128xf32, #tpu.memory_space<vmem>>, vector<1x128xf32>
    %121 = vector.shape_cast %120 : vector<1x128xf32> to vector<128xf32>
    %122 = vector.shape_cast %121 : vector<128xf32> to vector<1x128xf32>
    %123 = vector.broadcast %122 : vector<1x128xf32> to vector<128x128xf32>
    %124 = arith.addf %119, %123 : vector<128x128xf32>
    %125 = arith.addf %67, %124 : vector<128x128xf32>
    %c0_51 = arith.constant 0 : index
    %126 = arith.index_cast %65 : i32 to index
    %c0_52 = arith.constant 0 : index
    %127 = vector.load %arg14[%c0_51, %126, %c0_52] : memref<1x128x128xf32, #tpu.memory_space<vmem>>, vector<1x128x128xf32>
    %128 = vector.shape_cast %127 : vector<1x128x128xf32> to vector<128x128xf32>
    %129 = vector.shape_cast %125 : vector<128x128xf32> to vector<1x128x128xf32>
    tpu.vector_store %arg14[%c0_51, %126, %c0_52], %129 {strides = array<i32>} : memref<1x128x128xf32, #tpu.memory_space<vmem>>, vector<1x128x128xf32>,
    %c1_i32 = arith.constant 1 : i32
    return
  }
  func.func @transform_0(%arg0: i32) -> (i32, i32, i32) {
    %c0_i32 = arith.constant 0 : i32
    %c0_i32_0 = arith.constant 0 : i32
    %c0_i32_1 = arith.constant 0 : i32
    return %arg0, %c0_i32, %c0_i32_0 : i32, i32, i32
  }
  func.func @transform_1(%arg0: i32) -> (i32, i32) {
    %c0_i32 = arith.constant 0 : i32
    %c0_i32_0 = arith.constant 0 : i32
    %c0_i32_1 = arith.constant 0 : i32
    return %c0_i32, %c0_i32_0 : i32, i32
  }
  func.func @transform_2(%arg0: i32) -> (i32, i32) {
    %c0_i32 = arith.constant 0 : i32
    %c0_i32_0 = arith.constant 0 : i32
    %c0_i32_1 = arith.constant 0 : i32
    return %c0_i32, %c0_i32_0 : i32, i32
  }
  func.func @transform_3(%arg0: i32) -> (i32, i32) {
    %c0_i32 = arith.constant 0 : i32
    %c0_i32_0 = arith.constant 0 : i32
    %c0_i32_1 = arith.constant 0 : i32
    return %c0_i32, %c0_i32_0 : i32, i32
  }
  func.func @transform_4(%arg0: i32) -> (i32, i32) {
    %c0_i32 = arith.constant 0 : i32
    %c0_i32_0 = arith.constant 0 : i32
    %c0_i32_1 = arith.constant 0 : i32
    return %c0_i32, %c0_i32_0 : i32, i32
  }
  func.func @transform_5(%arg0: i32) -> (i32, i32) {
    %c0_i32 = arith.constant 0 : i32
    %c0_i32_0 = arith.constant 0 : i32
    %c0_i32_1 = arith.constant 0 : i32
    return %c0_i32, %c0_i32_0 : i32, i32
  }
  func.func @transform_6(%arg0: i32) -> (i32, i32) {
    %c0_i32 = arith.constant 0 : i32
    %c0_i32_0 = arith.constant 0 : i32
    %c0_i32_1 = arith.constant 0 : i32
    return %c0_i32, %c0_i32_0 : i32, i32
  }
  func.func @transform_7(%arg0: i32) -> (i32, i32) {
    %c0_i32 = arith.constant 0 : i32
    %c0_i32_0 = arith.constant 0 : i32
    %c0_i32_1 = arith.constant 0 : i32
    return %c0_i32, %c0_i32_0 : i32, i32
  }
  func.func @transform_8(%arg0: i32) -> (i32, i32) {
    %c0_i32 = arith.constant 0 : i32
    %c0_i32_0 = arith.constant 0 : i32
    %c0_i32_1 = arith.constant 0 : i32
    return %c0_i32, %c0_i32_0 : i32, i32
  }
  func.func @transform_9(%arg0: i32) -> (i32, i32) {
    %c0_i32 = arith.constant 0 : i32
    %c0_i32_0 = arith.constant 0 : i32
    %c0_i32_1 = arith.constant 0 : i32
    return %c0_i32, %c0_i32_0 : i32, i32
  }
  func.func @transform_10(%arg0: i32) -> (i32, i32) {
    %c0_i32 = arith.constant 0 : i32
    %c0_i32_0 = arith.constant 0 : i32
    %c0_i32_1 = arith.constant 0 : i32
    return %c0_i32, %c0_i32_0 : i32, i32
  }
  func.func @transform_11(%arg0: i32) -> (i32, i32) {
    %c0_i32 = arith.constant 0 : i32
    %c0_i32_0 = arith.constant 0 : i32
    %c0_i32_1 = arith.constant 0 : i32
    return %c0_i32, %c0_i32_0 : i32, i32
  }
  func.func @transform_12(%arg0: i32) -> (i32, i32) {
    %c0_i32 = arith.constant 0 : i32
    %c0_i32_0 = arith.constant 0 : i32
    %c0_i32_1 = arith.constant 0 : i32
    return %c0_i32, %c0_i32_0 : i32, i32
  }
  func.func @transform_13(%arg0: i32) -> (i32, i32, i32) {
    %c0_i32 = arith.constant 0 : i32
    %c0_i32_0 = arith.constant 0 : i32
    %c0_i32_1 = arith.constant 0 : i32
    return %arg0, %c0_i32, %c0_i32_0 : i32, i32, i32
  }
}

</mosaic_0001>

<bundles_post_ra>
// kernel: tpu_custom_call.1
= control target key start
LH: loop header
LB: loop body
LE: loop exit
PB: predicated region body
PF: predicated region fallthrough
CT: control target
= control target key end

     0   :  { %s4197_s0 = inlined_call_operand.vmem [shape: f32[2,128,128], index: 0, kind: input, shape index: {}]   ;;  %s4198_s1 = inlined_call_operand.vmem [shape: f32[1,128], index: 1, kind: input, shape index: {}]   ;;  %s4199_s2 = inlined_call_operand.vmem [shape: f32[1,128], index: 2, kind: input, shape index: {}]   ;;  %s4200_s3 = inlined_call_operand.hbm [shape: bf16[128,128], index: 3, kind: input, shape index: {}]   ;;  %s4201_s4 = inlined_call_operand.vmem [shape: f32[128,1], index: 4, kind: input, shape index: {}]   ;;  %s4202_s5 = inlined_call_operand.hbm [shape: bf16[128,128], index: 5, kind: input, shape index: {}]   ;;  %s4203_s6 = inlined_call_operand.vmem [shape: f32[128,1], index: 6, kind: input, shape index: {}]   ;;  %s4204_s7 = inlined_call_operand.vmem [shape: f32[1,128], index: 7, kind: input, shape index: {}]   ;;  %s4205_s8 = inlined_call_operand.vmem [shape: f32[1,128], index: 8, kind: input, shape index: {}]   ;;  %s4206_s9 = inlined_call_operand.hbm [shape: bf16[128,128], index: 9, kind: input, shape index: {}]   ;;  %s4207_s10 = inlined_call_operand.vmem [shape: f32[1,128], index: 10, kind: input, shape index: {}]   ;;  %s4208_s11 = inlined_call_operand.hbm [shape: bf16[128,128], index: 11, kind: input, shape index: {}]   ;;  %s4209_s12 = inlined_call_operand.vmem [shape: f32[1,128], index: 12, kind: input, shape index: {}]   ;;  %s4210_s13 = inlined_call_operand.hbm [shape: f32[2,128,128], index: 13, kind: output, shape index: {}]  }
   0x1   :  { %4223 = sst [smem:[#allocation23_spill]] %s4209_s12 }
   0x2   :  { %4224 = sst [smem:[#allocation24_spill]] %s4210_s13 }
   0x3   :  { %18 = vsyncpa [#allocation4], 0 }
   0x4   :  { %19 = vsyncpa [#allocation7], 0 }
   0x5   :  { %20 = vsyncpa [#allocation10], 0 }
   0x6   :  { %21 = vsyncpa [#allocation5], 0 }
   0x7   :  { %23 = vsyncpa [#allocation5 + $0x1], 0  ;;  %s3194_s25 = smov 0   ;;  %s3196_s26 = smov 0  }
   0x8   :  { %s3198_s27 = smov 0   ;;  %s3200_s28 = smov 0  }
   0x9 LB: > { %4225 = sst [smem:[#allocation16_spill]] %s3100_s25  ;;  %s3215_s29 = sadd.s32 4294967295, %s3112_s28   ;;  %s3112_s28 = sphi %s3200_s28, %s4252_s28   ;;  %s3108_s27 = sphi %s3198_s27, %s4254_s27   ;;  %s3104_s26 = sphi %s3196_s26, %s4256_s26   ;;  %s3100_s25 = sphi %s3194_s25, %s4255_s25  }
   0xa   : > { %4226 = sst [smem:[#allocation17_spill]] %s3108_s27  ;;  %s2411_s30 = sadd.s32 4294967294, %s3112_s28  }
   0xb   : > { %4227 = sst [smem:[#allocation18_spill]] %s3112_s28  ;;  %s3219_s14 = sadd.s32 1, %s3112_s28  }
   0xc   : > { %4228 = sst [smem:[#allocation19_spill]] %s3219_s14  ;;  %s314_s15 = sadd.s32 1, %s3108_s27 }
   0xd   : > { %s311_s16 = ssub.s32 %s3112_s28, %s3219_s14  ;;  %p324_p0 = scmp.ne.s32.totalorder %s3108_s27, %s3104_s26 }
   0xe   : > { %p312_p1 = scmp.eq.s32.totalorder %s311_s16, 0  ;;  %p325_p2 = scmp.eq.s32.totalorder %s3215_s29, 1 }
   0xf   : > { %p330_p3 = scmp.ne.s32.totalorder %s3104_s26, %s3100_s25  ;;  %p331_p4 = scmp.eq.s32.totalorder %s2411_s30, 1 }
  0x10   : > { %s3230_s17 = scalar_select %p312_p1, %s3108_s27, %s314_s15  }
  0x11   : > { %p3232_p5 = por %p325_p2, %p324_p0  ;;  %p3236_p6 = por %p331_p4, %p330_p3 }
  0x12   : > { %4229 = sst [smem:[#allocation20_spill]] %s3230_s17  ;;  %p2412_p7 = scmp.ge.s32.totalorder %s3112_s28, 1 }
  0x13   : > { %s4230_s18 = scalar_select %p3232_p5, 1, 0 }
  0x14   : > { %s4232_s19 = scalar_select %p3236_p6, 1, 0 }
  0x15   : > { %4231 = sst [smem:[#allocation21_spill]] %s4230_s18  ;;  %p338_p8 = scmp.lt.s32.totalorder %s3112_s28, 3 }
  0x16   : > { %4233 = sst [smem:[#allocation22_spill]] %s4232_s19  ;;  %p4216_p9 = scmp.eq.s32.totalorder %s3215_s29, 0 }
  0x17   : > { %p3243_p10 = pnand %p2412_p7, %p338_p8  ;;  %s3114_s21 = smov [#allocation6]  }
  0x18   : > { %s372_s22 = sshll.u32 %s3114_s21, 4  ;;  %s3115_s24 = smov [#allocation3]   ;;  %s3249_s22 = int_to_ptr.vmem [resolvable:$true] %s372_s22 }
  0x19   : > { %s4234_s20 = scalar_select %p3243_p10, 1, 0 }
  0x1a   : > { %p2681_p11 = pneg %p3243_p10  ;;  %s356_s30 = sshll.u32 %s3115_s24, 4  ;;  %s3257_s30 = int_to_ptr.vmem [resolvable:$true] %s356_s30 }
  0x1b   : > { %s3116_s15 = smov [#allocation8]   ;;  %s2926_s14 = scalar_lea.hbm %s4202_s5, 1024 }
  0x1c   : > { %p3253_p12 = pnand %p4216_p9, %p2681_p11  ;;  %s3259_s16 = sshll.u32 %s3116_s15, 4  ;;  %s395_s16 = int_to_ptr.vmem [resolvable:$true] %s3259_s16 }
  0x1d   : > { %p2927_p13 = scmp.ne.s32.totalorder %s4202_s5, %s2926_s14  ;;  %p2933_p3 = scmp.lt.u32.totalorder %s2926_s14, %s4202_s5 }
  0x1e   : > { %p3269_p0 = pneg %p3253_p12 }
  0x20   : > { %p2929_p1 = pnand %p3269_p0, %p2927_p13 }
  0x22   : > { %p2930_p2 = pneg %p2929_p1 }
  0x24   : > { %p2935_p4 = pnand %p2933_p3, %p2930_p2 }
  0x26   : > { %2938 = shalt.err (!%p2935_p4)
}
  0x27   : > { %s2939_s27 = scalar_lea.vmem %s3249_s22, 1024  ;;  %p2947_p9 = scmp.lt.s32.totalorder %s3249_s22, %s3249_s22 }
  0x28   : > { %p2940_p7 = scmp.ne.s32.totalorder %s3249_s22, %s2939_s27  ;;  %p2948_p6 = scmp.lt.s32.totalorder %s2939_s27, %s2939_s27 }
  0x2a   : > { %p2942_p8 = pnand %p2940_p7, %p3269_p0  ;;  %p2949_p13 = por %p2948_p6, %p2947_p9 }
  0x2c   : > { %p2943_p11 = pneg %p2942_p8 }
  0x2e   : > { %p2950_p1 = pnand %p2949_p13, %p2943_p11 }
  0x30   : > { %2953 = shalt.err (!%p2950_p1)
}
  0x31   : > { %s3117_s17 = smov 64   ;;  %s3118_s14 = smov 4  }
  0x32   : > { %2687 = dma.hbm_to_vmem [thread:$0]  (!%p3253_p12), %s4202_s5, 1024, %s3249_s22, [#allocation7], %s3117_s17, %s3117_s17, %s3118_s14  }
  0x33   : > { %s2954_s27 = scalar_lea.hbm %s4200_s3, 1024 }
  0x34   : > { %p2955_p6 = scmp.ne.s32.totalorder %s4200_s3, %s2954_s27  ;;  %p2961_p3 = scmp.lt.u32.totalorder %s2954_s27, %s4200_s3 }
  0x36   : > { %p2957_p9 = pnand %p2955_p6, %p3269_p0 }
  0x38   : > { %p2958_p2 = pneg %p2957_p9 }
  0x3a   : > { %p2963_p4 = pnand %p2961_p3, %p2958_p2 }
  0x3c   : > { %2966 = shalt.err (!%p2963_p4)
}
  0x3d   : > { %s2967_s22 = scalar_lea.vmem %s3257_s30, 1024  ;;  %p2975_p13 = scmp.lt.s32.totalorder %s3257_s30, %s3257_s30 }
  0x3e   : > { %p2968_p7 = scmp.ne.s32.totalorder %s3257_s30, %s2967_s22  ;;  %p2976_p1 = scmp.lt.s32.totalorder %s2967_s22, %s2967_s22 }
  0x40   : > { %p2970_p8 = pnand %p2968_p7, %p3269_p0  ;;  %p2977_p6 = por %p2976_p1, %p2975_p13 }
  0x42   : > { %p2971_p11 = pneg %p2970_p8 }
  0x44   : > { %p2978_p9 = pnand %p2977_p6, %p2971_p11 }
  0x46   : > { %2981 = shalt.err (!%p2978_p9)
}
  0x47   : > { %2684 = dma.hbm_to_vmem [thread:$0]  (!%p3253_p12), %s4200_s3, 1024, %s3257_s30, [#allocation4], %s3117_s17, %s3117_s17, %s3118_s14  }
  0x48   : > { %s2982_s19 = scalar_lea.hbm %s4206_s9, 1024 }
  0x49   : > { %p2983_p2 = scmp.ne.s32.totalorder %s4206_s9, %s2982_s19  ;;  %p2989_p7 = scmp.lt.u32.totalorder %s2982_s19, %s4206_s9 }
  0x4b   : > { %p2985_p3 = pnand %p2983_p2, %p3269_p0 }
  0x4d   : > { %p2986_p4 = pneg %p2985_p3 }
  0x4f   : > { %p2991_p8 = pnand %p2989_p7, %p2986_p4 }
  0x51   : > { %2994 = shalt.err (!%p2991_p8)
}
  0x52   : > { %s2995_s22 = scalar_lea.vmem %s395_s16, 1024  ;;  %p3003_p6 = scmp.lt.s32.totalorder %s395_s16, %s395_s16 }
  0x53   : > { %p2996_p11 = scmp.ne.s32.totalorder %s395_s16, %s2995_s22  ;;  %p3004_p9 = scmp.lt.s32.totalorder %s2995_s22, %s2995_s22 }
  0x55   : > { %p2998_p13 = pnand %p2996_p11, %p3269_p0  ;;  %p3005_p5 = por %p3004_p9, %p3003_p6 }
  0x57   : > { %p2999_p1 = pneg %p2998_p13 }
  0x59   : > { %p3006_p10 = pnand %p3005_p5, %p2999_p1 }
  0x5b   : > { %3009 = shalt.err (!%p3006_p10)
}
  0x5c   : > { %2690 = dma.hbm_to_vmem [thread:$0]  (!%p3253_p12), %s4206_s9, 1024, %s395_s16, [#allocation7], %s3117_s17, %s3117_s17, %s3118_s14  }
  0x5d   : > { %s3119_s13 = smov [#allocation9]   ;;  %s3010_s21 = scalar_lea.hbm %s4208_s11, 1024 }
  0x5e   : > { %s410_s28 = sshll.u32 %s3119_s13, 4  ;;  %p3011_p5 = scmp.ne.s32.totalorder %s4208_s11, %s3010_s21  ;;  %s411_s28 = int_to_ptr.vmem [resolvable:$true] %s410_s28 }
  0x5f   : > { %p3017_p3 = scmp.lt.u32.totalorder %s3010_s21, %s4208_s11 }
  0x60   : > { %p3013_p10 = pnand %p3011_p5, %p3269_p0 }
  0x62   : > { %p3014_p2 = pneg %p3013_p10 }
  0x64   : > { %p3019_p4 = pnand %p3017_p3, %p3014_p2 }
  0x66   : > { %3022 = shalt.err (!%p3019_p4)
}
  0x67   : > { %s3023_s16 = scalar_lea.vmem %s411_s28, 1024  ;;  %p3031_p13 = scmp.lt.s32.totalorder %s411_s28, %s411_s28 }
  0x68   : > { %p3024_p7 = scmp.ne.s32.totalorder %s411_s28, %s3023_s16  ;;  %p3032_p1 = scmp.lt.s32.totalorder %s3023_s16, %s3023_s16 }
  0x6a   : > { %p3026_p8 = pnand %p3024_p7, %p3269_p0  ;;  %p3033_p6 = por %p3032_p1, %p3031_p13 }
  0x6c   : > { %p3027_p11 = pneg %p3026_p8 }
  0x6e   : > { %p3034_p9 = pnand %p3033_p6, %p3027_p11 }
  0x70   : > { %3037 = shalt.err (!%p3034_p9)
}
  0x71   : > { %2693 = dma.hbm_to_vmem [thread:$0]  (!%p3253_p12), %s4208_s11, 1024, %s411_s28, [#allocation10], %s3117_s17, %s3117_s17, %s3118_s14  }
  0x72   : > { %p4237_p5 = scmp.ne.s32.totalorder %s4234_s20, 0 }
  0x73   : > { %p4238_p0 = scmp.eq.s32.totalorder (!%p4237_p5), %s3215_s29, 0 }
  0x74   : > { %437 = sbr.rel (%p4237_p5) target bundleno = 1573 (0x625), region = 72 }
  0x7b   : > { %3083 = dma.done.wait (%p4238_p0), [#allocation4], 1024   ;;  %p4239_p10 = pmov %p4238_p0 }
  0x7c   : > { %p4240_p2 = pmov %p4238_p0 }
  0x7d   : > { %3085 = vsyncadd (%p4239_p10), [#allocation4], 4294966272 }
  0x7e   : > { %3087 = dma.done.wait (%p4240_p2), [#allocation7], 2048   ;;  %p4241_p3 = pmov %p4238_p0 }
  0x7f   : > { %p4242_p4 = pmov %p4238_p0 }
  0x80   : > { %3089 = vsyncadd (%p4241_p3), [#allocation7], 4294965248 }
  0x81   : > { %3091 = dma.done.wait (%p4242_p4), [#allocation10], 1024   ;;  %p4243_p12 = pmov %p4238_p0 }
  0x82   : > { %p493_p7 = scmp.lt.s32.totalorder %s3215_s29, 1  ;;  %v2750_v32 = vld [vmem:[#allocation3] sm:$0xff]   ;;  %v794_v33 = vld [vmem:[%s4201_s4 + $0x8] sm:$0xff]  ;;  %v3120_v34 = vmov 0   ;;  %v795_v35 = vld [vmem:[%s4201_s4 + $0x10] sm:$0xff]  ;;  %s490_s16 = sand.u32 1, %s3104_s26  }
  0x83   : > { %3093 = vsyncadd (%p4243_p12), [#allocation10], 4294966272  ;;  %2551 = vmatprep.mubr.bf16.mxu0 %v2750_v32  ;;  %2749 = vset.pattern.permute.xlu1 %v3120_v34  ;;  %v796_v36 = vld [vmem:[%s4201_s4 + $0x18] sm:$0xff]  ;;  %v797_v37 = vld [vmem:[%s4201_s4 + $0x20] sm:$0xff]  ;;  %s2470_s17 = sshll.u32 %s3215_s29, 11  ;;  %s4245_s28 = sld [smem:[#allocation21_spill]] }
  0x84   : > { %s494_s25 = scalar_select %p493_p7, %s3215_s29, 1  ;;  %2748 = vset.pattern.permute.xlu0 %v3120_v34  ;;  %v798_v38 = vld [vmem:[%s4201_s4 + $0x28] sm:$0xff]  ;;  %v799_v39 = vld [vmem:[%s4201_s4 + $0x30] sm:$0xff]  ;;  %v800_v40 = vld [vmem:[%s4201_s4 + $0x38] sm:$0xff] }
  0x85   : > { %v793_v41 = vld [vmem:[%s4201_s4] sm:$0xff]  ;;  %v802_v43 = vld [vmem:[%s4201_s4 + $0x48] sm:$0xff]  ;;  %v803_v44 = vld [vmem:[%s4201_s4 + $0x50] sm:$0xff]  ;;  %s4156_s29 = scalar_lea.sflag [#allocation5], %s490_s16  ;;  %s3121_s15 = smov [#allocation11]  }
  0x86   : > { %s2469_s20 = sshll.u32 %s494_s25, 7  ;;  %v801_v42 = vld [vmem:[%s4201_s4 + $0x40] sm:$0xff]  ;;  %v804_v45 = vld [vmem:[%s4201_s4 + $0x58] sm:$0xff]  ;;  %v806_v47 = vld [vmem:[%s4201_s4 + $0x68] sm:$0xff]  ;;  %s4244_s25 = sld [smem:[#allocation23_spill]] }
  0x87   : > { %s3381_s14 = scalar_lea.vmem %s4197_s0, %s2469_s20  ;;  %v805_v46 = vld [vmem:[%s4201_s4 + $0x60] sm:$0xff]  ;;  %v807_v51 = vld [vmem:[%s4201_s4 + $0x70] sm:$0xff]  ;;  %v808_v52 = vld [vmem:[%s4201_s4 + $0x78] sm:$0xff]  ;;  %s2423_s20 = sshll.u32 %s490_s16, 7 }
  0x88   : > { %v3384_v0 = vld [vmem:[%s3381_s14 + $0x18] sm:$0xff]  ;;  %v3387_v1 = vld [vmem:[%s3381_s14] sm:$0xff]  ;;  %v3394_v3 = vld [vmem:[%s3381_s14 + $0x8] sm:$0xff]  ;;  %s4113_s23 = scalar_lea.vmem [#allocation11], %s2423_s20  ;;  %s3042_s27 = sshll.u32 %s3121_s15, 4  ;;  %s3043_s27 = int_to_ptr.vmem [resolvable:$false] %s3042_s27 }
  0x89   : > { %523 = vadd.xlane.f32.xlu1 %v3384_v0  ;;  %517 = vadd.xlane.f32.xlu0 %v3387_v1  ;;  %v549_v2 = vmul.f32 %v3387_v1, %v3387_v1  ;;  %v3398_v4 = vld [vmem:[%s3381_s14 + $0x10] sm:$0xff]  ;;  %v550_v5 = vmul.f32 %v3394_v3, %v3394_v3  ;;  %v552_v7 = vmul.f32 %v3384_v0, %v3384_v0  ;;  %v3408_v8 = vld [vmem:[%s3381_s14 + $0x20] sm:$0xff]  ;;  %v3411_v9 = vld [vmem:[%s3381_s14 + $0x28] sm:$0xff]  ;;  %s2308_s13 = sshll.u32 %s4113_s23, 4  ;;  %p4247_p11 = scmp.ne.s32.totalorder %s4245_s28, 0  ;;  %s4148_s13 = int_to_ptr.vmem [resolvable:$true] %s2308_s13 }
  0x8a   : > { %v551_v6 = vmul.f32 %v3398_v4, %v3398_v4  ;;  %v553_v10 = vmul.f32 %v3408_v8, %v3408_v8  ;;  %v554_v11 = vmul.f32 %v3411_v9, %v3411_v9  ;;  %v3420_v12 = vld [vmem:[%s3381_s14 + $0x30] sm:$0xff]  ;;  %v3423_v13 = vld [vmem:[%s3381_s14 + $0x38] sm:$0xff]  ;;  %v3432_v16 = vld [vmem:[%s3381_s14 + $0x40] sm:$0xff]  ;;  %s3038_s24 = scalar_lea.vmem %s4148_s13, 2048  ;;  %s3044_s22 = scalar_lea.vmem %s3043_s27, 4096 }
  0x8b   : > { %v555_v14 = vmul.f32 %v3420_v12, %v3420_v12  ;;  %v556_v15 = vmul.f32 %v3423_v13, %v3423_v13  ;;  %v3435_v17 = vld [vmem:[%s3381_s14 + $0x48] sm:$0xff]  ;;  %v557_v18 = vmul.f32 %v3432_v16, %v3432_v16  ;;  %v3444_v20 = vld [vmem:[%s3381_s14 + $0x50] sm:$0xff]  ;;  %v3447_v21 = vld [vmem:[%s3381_s14 + $0x58] sm:$0xff]  ;;  %p3039_p8 = scmp.ne.s32.totalorder %s4148_s13, %s3038_s24  ;;  %p3045_p6 = scmp.lt.s32.totalorder %s4148_s13, %s3043_s27 }
  0x8c   : > { %v558_v19 = vmul.f32 %v3435_v17, %v3435_v17  ;;  %v559_v22 = vmul.f32 %v3444_v20, %v3444_v20  ;;  %v560_v23 = vmul.f32 %v3447_v21, %v3447_v21  ;;  %v3456_v24 = vld [vmem:[%s3381_s14 + $0x60] sm:$0xff]  ;;  %v3459_v25 = vld [vmem:[%s3381_s14 + $0x68] sm:$0xff]  ;;  %v3468_v28 = vld [vmem:[%s3381_s14 + $0x70] sm:$0xff]  ;;  %p3046_p9 = scmp.lt.s32.totalorder %s3044_s22, %s3038_s24 }
  0x8d   : > { %519 = vadd.xlane.f32.xlu0 %v3394_v3  ;;  %565 = vadd.xlane.f32.xlu1 %v549_v2  ;;  %v561_v26 = vmul.f32 %v3456_v24, %v3456_v24  ;;  %v562_v27 = vmul.f32 %v3459_v25, %v3459_v25  ;;  %v3471_v29 = vld [vmem:[%s3381_s14 + $0x78] sm:$0xff]  ;;  %v563_v30 = vmul.f32 %v3468_v28, %v3468_v28  ;;  %v1202_v58 = vld [vmem:[%s4203_s6] sm:$0xff]  ;;  %v1203_v59 = vld [vmem:[%s4203_s6 + $0x8] sm:$0xff]  ;;  %p3040_p13 = pnand %p3039_p8, %p4247_p11 }
  0x8e   : > { %v564_v31 = vmul.f32 %v3471_v29, %v3471_v29  ;;  %p3047_p5 = por %p3046_p9, %p3045_p6 }
  0x8f   : > { %p3041_p1 = pneg %p3040_p13 }
  0x91   : > { %521 = vadd.xlane.f32.xlu0 %v3398_v4  ;;  %567 = vadd.xlane.f32.xlu1 %v550_v5  ;;  %p3048_p0 = pnand %p3047_p5, %p3041_p1 }
  0x95   : > { %569 = vadd.xlane.f32.xlu0 %v551_v6  ;;  %571 = vadd.xlane.f32.xlu1 %v552_v7 }
  0x99   : > { %525 = vadd.xlane.f32.xlu0 %v3408_v8  ;;  %527 = vadd.xlane.f32.xlu1 %v3411_v9 }
  0x9d   : > { %573 = vadd.xlane.f32.xlu0 %v553_v10  ;;  %575 = vadd.xlane.f32.xlu1 %v554_v11  ;;  %v1204_v10 = vld [vmem:[%s4203_s6 + $0x10] sm:$0xff]  ;;  %v1205_v11 = vld [vmem:[%s4203_s6 + $0x18] sm:$0xff] }
  0xa1   : > { %529 = vadd.xlane.f32.xlu0 %v3420_v12  ;;  %531 = vadd.xlane.f32.xlu1 %v3423_v13 }
  0xa5   : > { %577 = vadd.xlane.f32.xlu0 %v555_v14  ;;  %579 = vadd.xlane.f32.xlu1 %v556_v15 }
  0xa9   : > { %533 = vadd.xlane.f32.xlu0 %v3432_v16  ;;  %535 = vadd.xlane.f32.xlu1 %v3435_v17 }
  0xad   : > { %581 = vadd.xlane.f32.xlu0 %v557_v18  ;;  %583 = vadd.xlane.f32.xlu1 %v558_v19 }
  0xb1   : > { %537 = vadd.xlane.f32.xlu0 %v3444_v20  ;;  %539 = vadd.xlane.f32.xlu1 %v3447_v21 }
  0xb5   : > { %585 = vadd.xlane.f32.xlu0 %v559_v22  ;;  %587 = vadd.xlane.f32.xlu1 %v560_v23 }
  0xb9   : > { %541 = vadd.xlane.f32.xlu0 %v3456_v24  ;;  %543 = vadd.xlane.f32.xlu1 %v3459_v25 }
  0xbd   : > { %589 = vadd.xlane.f32.xlu0 %v561_v26  ;;  %591 = vadd.xlane.f32.xlu1 %v562_v27 }
  0xc1   : > { %545 = vadd.xlane.f32.xlu0 %v3468_v28  ;;  %547 = vadd.xlane.f32.xlu1 %v3471_v29 }
  0xc5   : > { %593 = vadd.xlane.f32.xlu0 %v563_v30  ;;  %595 = vadd.xlane.f32.xlu1 %v564_v31  ;;  %v1206_v30 = vld [vmem:[%s4203_s6 + $0x20] sm:$0xff]  ;;  %v1207_v31 = vld [vmem:[%s4203_s6 + $0x28] sm:$0xff] }
  0xd6   : > { %816 = vperm.xlu1 %2749, %v794_v33  }
  0xda   : > { %821 = vperm.xlu1 %2749, %v795_v35  }
  0xdb   : > { %811 = vperm.xlu0 %2748, %v793_v41   ;;  %v1209_v41 = vld [vmem:[%s4203_s6 + $0x38] sm:$0xff] }
  0xde   : > { %826 = vperm.xlu1 %2749, %v796_v36  }
  0xdf   : > { %856 = vperm.xlu0 %2748, %v802_v43  }
  0xe2   : > { %831 = vperm.xlu1 %2749, %v797_v37  }
  0xe3   : > { %866 = vperm.xlu0 %2748, %v804_v45  }
  0xe6   : > { %836 = vperm.xlu1 %2749, %v798_v38  }
  0xe7   : > { %876 = vperm.xlu0 %2748, %v806_v47  }
  0xea   : > { %841 = vperm.xlu1 %2749, %v799_v39  }
  0xeb   : > { %886 = vperm.xlu0 %2748, %v808_v52   ;;  %v1210_v52 = vld [vmem:[%s4203_s6 + $0x40] sm:$0xff] }
  0xee   : > { %846 = vperm.xlu1 %2749, %v800_v40   ;;  %v1208_v40 = vld [vmem:[%s4203_s6 + $0x30] sm:$0xff] }
  0xef   : > { %1225 = vperm.xlu0 %2748, %v1203_v59  }
  0xf2   : > { %851 = vperm.xlu1 %2749, %v801_v42  }
  0xf3   : > { %1235 = vperm.xlu0 %2748, %v1205_v11  }
  0xf6   : > { %861 = vperm.xlu1 %2749, %v803_v44  }
  0xf7   : > { %1245 = vperm.xlu0 %2748, %v1207_v31   ;;  %v1214_v31 = vld [vmem:[%s4203_s6 + $0x60] sm:$0xff] }
  0xfa   : > { %871 = vperm.xlu1 %2749, %v805_v46  }
  0xfb   : > { %1255 = vperm.xlu0 %2748, %v1209_v41  }
  0xfe   : > { %881 = vperm.xlu1 %2749, %v807_v51  }
 0x102   : > { %1220 = vperm.xlu1 %2749, %v1202_v58  }
 0x106   : > { %1230 = vperm.xlu1 %2749, %v1204_v10   ;;  %v1212_v10 = vld [vmem:[%s4203_s6 + $0x50] sm:$0xff] }
 0x10a   : > { %1240 = vperm.xlu1 %2749, %v1206_v30  }
 0x10e   : > { %1250 = vperm.xlu1 %2749, %v1208_v40  }
 0x112   : > { %1260 = vperm.xlu1 %2749, %v1210_v52  }
 0x116   : > { %v524_v48 = vpop.xlane.xlu1 %523  ;;  %v518_v49 = vpop.xlane.xlu0 %517  ;;  %1270 = vperm.xlu1 %2749, %v1212_v10  }
 0x117   : > { %v3521_v50 = vmul.f32 0.03125, %v518_v49  ;;  %v3539_v61 = vmul.f32 0.03125, %v524_v48 }
 0x119   : > { %v629_v55 = vmul.f32 %v3521_v50, %v3521_v50  ;;  %v632_v15 = vmul.f32 %v3539_v61, %v3539_v61  ;;  %v661_v42 = vsub.f32 %v3387_v1, %v3521_v50  ;;  %v1211_v1 = vld [vmem:[%s4203_s6 + $0x48] sm:$0xff]  ;;  %v664_v11 = vsub.f32 %v3384_v0, %v3539_v61 }
 0x11a   : > { %v520_v53 = vpop.xlane.xlu0 %519  ;;  %v566_v54 = vpop.xlane.xlu1 %565  ;;  %1265 = vperm.xlu0 %2748, %v1211_v1   ;;  %1280 = vperm.xlu1 %2749, %v1214_v31  }
 0x11b   : > { %v3531_v56 = vmul.f32 0.03125, %v520_v53  ;;  %v613_v57 = vmul.f32 0.03125, %v566_v54  ;;  %v3586_v54 = vld [vmem:[%s4198_s1] ss:$0 sm:$0xff] }
 0x11d   : > { %v645_v60 = vsub.f32 %v613_v57, %v629_v55  ;;  %v630_v2 = vmul.f32 %v3531_v56, %v3531_v56  ;;  %v662_v55 = vsub.f32 %v3394_v3, %v3531_v56  ;;  %v1213_v3 = vld [vmem:[%s4203_s6 + $0x58] sm:$0xff]  ;;  %v3604_v56 = vld [vmem:[%s4199_s2] ss:$0 sm:$0xff] }
 0x11e   : > { %v522_v62 = vpop.xlane.xlu0 %521  ;;  %v568_v63 = vpop.xlane.xlu1 %567  ;;  %1275 = vperm.xlu0 %2748, %v1213_v3  }
 0x11f   : > { %v677_v5 = vadd.f32 1e-06, %v645_v60  ;;  %v3543_v6 = vmul.f32 0.03125, %v522_v62  ;;  %v614_v7 = vmul.f32 0.03125, %v568_v63 }
 0x121   : > { %2782 = vrsqrt.f32 %v677_v5  ;;  %v646_v14 = vsub.f32 %v614_v7, %v630_v2  ;;  %v631_v22 = vmul.f32 %v3543_v6, %v3543_v6 }
 0x122   : > { %v570_v18 = vpop.xlane.xlu0 %569  ;;  %v572_v19 = vpop.xlane.xlu1 %571 }
 0x123   : > { %v678_v23 = vadd.f32 1e-06, %v646_v14  ;;  %v615_v26 = vmul.f32 0.03125, %v570_v18  ;;  %v616_v27 = vmul.f32 0.03125, %v572_v19  ;;  %v663_v14 = vsub.f32 %v3398_v4, %v3543_v6 }
 0x125   : > { %2784 = vrsqrt.f32 %v678_v23  ;;  %v647_v32 = vsub.f32 %v615_v26, %v631_v22  ;;  %v648_v33 = vsub.f32 %v616_v27, %v632_v15 }
 0x126   : > { %v526_v34 = vpop.xlane.xlu0 %525  ;;  %v528_v35 = vpop.xlane.xlu1 %527 }
 0x127   : > { %v679_v36 = vadd.f32 1e-06, %v647_v32  ;;  %v680_v37 = vadd.f32 1e-06, %v648_v33  ;;  %v3561_v38 = vmul.f32 0.03125, %v526_v34  ;;  %v3563_v39 = vmul.f32 0.03125, %v528_v35 }
 0x128   : > { %v1215_v32 = vld [vmem:[%s4203_s6 + $0x68] sm:$0xff] }
 0x129   : > { %2786 = vrsqrt.f32 %v679_v36  ;;  %v633_v46 = vmul.f32 %v3561_v38, %v3561_v38  ;;  %v634_v47 = vmul.f32 %v3563_v39, %v3563_v39  ;;  %1285 = vperm.xlu0 %2748, %v1215_v32   ;;  %v666_v52 = vsub.f32 %v3411_v9, %v3563_v39 }
 0x12a   : > { %2788 = vrsqrt.f32 %v680_v37  ;;  %v574_v43 = vpop.xlane.xlu0 %573  ;;  %v576_v44 = vpop.xlane.xlu1 %575 }
 0x12b   : > { %v2783_v45 = vpop.eup %2782  ;;  %v617_v48 = vmul.f32 0.03125, %v574_v43  ;;  %v618_v49 = vmul.f32 0.03125, %v576_v44 }
 0x12c   : > { %v709_v51 = vmul.f32 %v2783_v45, %v661_v42 }
 0x12d   : > { %v649_v50 = vsub.f32 %v617_v48, %v633_v46  ;;  %v650_v53 = vsub.f32 %v618_v49, %v634_v47  ;;  %v1216_v48 = vld [vmem:[%s4203_s6 + $0x70] sm:$0xff]  ;;  %v1217_v49 = vld [vmem:[%s4203_s6 + $0x78] sm:$0xff] }
 0x12e   : > { %v530_v57 = vpop.xlane.xlu0 %529  ;;  %v532_v58 = vpop.xlane.xlu1 %531  ;;  %v731_v7 = vmul.f32 %v3586_v54, %v709_v51  ;;  %v665_v51 = vsub.f32 %v3408_v8, %v3561_v38  ;;  %1290 = vperm.xlu1 %2749, %v1216_v48   ;;  %1295 = vperm.xlu0 %2748, %v1217_v49  }
 0x12f   : > { %v2785_v59 = vpop.eup %2784  ;;  %v681_v60 = vadd.f32 1e-06, %v649_v50  ;;  %v682_v62 = vadd.f32 1e-06, %v650_v53  ;;  %v3590_v63 = vmul.f32 0.03125, %v530_v57  ;;  %v3592_v2 = vmul.f32 0.03125, %v532_v58 }
 0x130   : > { %v710_v5 = vmul.f32 %v2785_v59, %v662_v55  ;;  %v753_v61 = vadd.f32 %v3604_v56, %v731_v7 }
 0x131   : > { %2790 = vrsqrt.f32 %v681_v60  ;;  %v635_v23 = vmul.f32 %v3590_v63, %v3590_v63  ;;  %v636_v26 = vmul.f32 %v3592_v2, %v3592_v2 }
 0x132   : > { %2792 = vrsqrt.f32 %v682_v62  ;;  %v578_v15 = vpop.xlane.xlu0 %577  ;;  %v580_v18 = vpop.xlane.xlu1 %579  ;;  %v732_v19 = vmul.f32 %v3586_v54, %v710_v5 }
 0x133   : > { %v2787_v22 = vpop.eup %2786  ;;  %v619_v27 = vmul.f32 0.03125, %v578_v15  ;;  %v620_v30 = vmul.f32 0.03125, %v580_v18 }
 0x134   : > { %v2789_v0 = vpop.eup %2788  ;;  %v754_v4 = vadd.f32 %v3604_v56, %v732_v19  ;;  %v711_v6 = vmul.f32 %v2787_v22, %v663_v14 }
 0x135   : > { %v651_v33 = vsub.f32 %v619_v27, %v635_v23  ;;  %v652_v34 = vsub.f32 %v620_v30, %v636_v26  ;;  %v712_v35 = vmul.f32 %v2789_v0, %v664_v11  ;;  %v667_v23 = vsub.f32 %v3420_v12, %v3590_v63 }
 0x136   : > { %v534_v36 = vpop.xlane.xlu0 %533  ;;  %v536_v37 = vpop.xlane.xlu1 %535  ;;  %v785_v40 = vpack.c.bf16 %v754_v4, %v753_v61  ;;  %v733_v41 = vmul.f32 %v3586_v54, %v711_v6  ;;  %v668_v26 = vsub.f32 %v3423_v13, %v3592_v2 }
 0x137   : > { %v683_v42 = vadd.f32 1e-06, %v651_v33  ;;  %v684_v43 = vadd.f32 1e-06, %v652_v34  ;;  %v3624_v44 = vmul.f32 0.03125, %v534_v36  ;;  %v3626_v45 = vmul.f32 0.03125, %v536_v37 }
 0x138   : > { %2535 = vmatprep.subr.bf16.mxu0 %v785_v40  ;;  %v734_v46 = vmul.f32 %v3586_v54, %v712_v35  ;;  %v755_v47 = vadd.f32 %v3604_v56, %v733_v41 }
 0x139   : > { %2794 = vrsqrt.f32 %v683_v42  ;;  %2536 = vmatpush3.bf16.msra.mxu0 %v785_v40  ;;  %v637_v57 = vmul.f32 %v3624_v44, %v3624_v44  ;;  %v638_v58 = vmul.f32 %v3626_v45, %v3626_v45  ;;  %v669_v48 = vsub.f32 %v3432_v16, %v3624_v44 }
 0x13a   : > { %2796 = vrsqrt.f32 %v684_v43  ;;  %v582_v1 = vpop.xlane.xlu0 %581  ;;  %v584_v50 = vpop.xlane.xlu1 %583  ;;  %v756_v53 = vadd.f32 %v3604_v56, %v734_v46  ;;  %v670_v49 = vsub.f32 %v3435_v17, %v3626_v45 }
 0x13b   : > { %v2791_v55 = vpop.eup %2790  ;;  %v621_v59 = vmul.f32 0.03125, %v582_v1  ;;  %v622_v60 = vmul.f32 0.03125, %v584_v50 }
 0x13c   : > { %v2793_v8 = vpop.eup %2792  ;;  %v786_v38 = vpack.c.bf16 %v756_v53, %v755_v47  ;;  %v713_v62 = vmul.f32 %v2791_v55, %v665_v51 }
 0x13d   : > { %v653_v9 = vsub.f32 %v621_v59, %v637_v57  ;;  %v654_v39 = vsub.f32 %v622_v60, %v638_v58  ;;  %v714_v5 = vmul.f32 %v2793_v8, %v666_v52 }
 0x13e   : > { %2537 = vmatprep.subr.bf16.mxu0 %v786_v38  ;;  %v538_v7 = vpop.xlane.xlu0 %537  ;;  %v540_v10 = vpop.xlane.xlu1 %539  ;;  %v735_v3 = vmul.f32 %v3586_v54, %v713_v62 }
 0x13f   : > { %v685_v11 = vadd.f32 1e-06, %v653_v9  ;;  %v686_v14 = vadd.f32 1e-06, %v654_v39  ;;  %2538 = vmatpush3.bf16.msra.mxu0 %v786_v38  ;;  %v3646_v15 = vmul.f32 0.03125, %v538_v7  ;;  %v3648_v18 = vmul.f32 0.03125, %v540_v10 }
 0x140   : > { %v736_v19 = vmul.f32 %v3586_v54, %v714_v5  ;;  %v757_v22 = vadd.f32 %v3604_v56, %v735_v3 }
 0x141   : > { %2798 = vrsqrt.f32 %v685_v11  ;;  %v639_v4 = vmul.f32 %v3646_v15, %v3646_v15  ;;  %v640_v6 = vmul.f32 %v3648_v18, %v3648_v18  ;;  %v671_v11 = vsub.f32 %v3444_v20, %v3646_v15 }
 0x142   : > { %2800 = vrsqrt.f32 %v686_v14  ;;  %v586_v27 = vpop.xlane.xlu0 %585  ;;  %v588_v30 = vpop.xlane.xlu1 %587  ;;  %v758_v0 = vadd.f32 %v3604_v56, %v736_v19  ;;  %v672_v14 = vsub.f32 %v3447_v21, %v3648_v18 }
 0x143   : > { %v2795_v61 = vpop.eup %2794  ;;  %v623_v31 = vmul.f32 0.03125, %v586_v27  ;;  %v624_v32 = vmul.f32 0.03125, %v588_v30 }
 0x144   : > { %v2797_v33 = vpop.eup %2796  ;;  %v787_v34 = vpack.c.bf16 %v758_v0, %v757_v22  ;;  %v715_v12 = vmul.f32 %v2795_v61, %v667_v23 }
 0x145   : > { %v655_v63 = vsub.f32 %v623_v31, %v639_v4  ;;  %v656_v35 = vsub.f32 %v624_v32, %v640_v6  ;;  %v716_v13 = vmul.f32 %v2797_v33, %v668_v26 }
 0x146   : > { %2539 = vmatprep.subr.bf16.mxu0 %v787_v34  ;;  %v542_v2 = vpop.xlane.xlu0 %541  ;;  %v544_v36 = vpop.xlane.xlu1 %543  ;;  %v737_v37 = vmul.f32 %v3586_v54, %v715_v12 }
 0x147   : > { %v687_v40 = vadd.f32 1e-06, %v655_v63  ;;  %v688_v41 = vadd.f32 1e-06, %v656_v35  ;;  %2540 = vmatpush3.bf16.msra.mxu0 %v787_v34  ;;  %v3662_v42 = vmul.f32 0.03125, %v542_v2  ;;  %v3664_v43 = vmul.f32 0.03125, %v544_v36 }
 0x148   : > { %v738_v46 = vmul.f32 %v3586_v54, %v716_v13  ;;  %v759_v47 = vadd.f32 %v3604_v56, %v737_v37 }
 0x149   : > { %2802 = vrsqrt.f32 %v687_v40  ;;  %v641_v53 = vmul.f32 %v3662_v42, %v3662_v42  ;;  %v642_v55 = vmul.f32 %v3664_v43, %v3664_v43  ;;  %v673_v35 = vsub.f32 %v3456_v24, %v3662_v42 }
 0x14a   : > { %2804 = vrsqrt.f32 %v688_v41  ;;  %v590_v51 = vpop.xlane.xlu0 %589  ;;  %v592_v52 = vpop.xlane.xlu1 %591  ;;  %v760_v1 = vadd.f32 %v3604_v56, %v738_v46  ;;  %v674_v2 = vsub.f32 %v3459_v25, %v3664_v43 }
 0x14b   : > { %v2799_v50 = vpop.eup %2798  ;;  %v625_v57 = vmul.f32 0.03125, %v590_v51  ;;  %v626_v58 = vmul.f32 0.03125, %v592_v52 }
 0x14c   : > { %v2801_v59 = vpop.eup %2800  ;;  %v788_v60 = vpack.c.bf16 %v760_v1, %v759_v47  ;;  %v717_v16 = vmul.f32 %v2799_v50, %v669_v48 }
 0x14d   : > { %v657_v44 = vsub.f32 %v625_v57, %v641_v53  ;;  %v658_v8 = vsub.f32 %v626_v58, %v642_v55  ;;  %v718_v17 = vmul.f32 %v2801_v59, %v670_v49  ;;  %v2752_v59 = vld [vmem:[#allocation3 + $0x10] sm:$0xff]  }
 0x14e   : > { %2541 = vmatprep.subr.bf16.mxu0 %v788_v60  ;;  %v546_v45 = vpop.xlane.xlu0 %545  ;;  %v548_v38 = vpop.xlane.xlu1 %547  ;;  %v739_v62 = vmul.f32 %v3586_v54, %v717_v16  ;;  %v2755_v16 = vld [vmem:[#allocation3 + $0x28] sm:$0xff]  }
 0x14f   : > { %v689_v9 = vadd.f32 1e-06, %v657_v44  ;;  %v690_v39 = vadd.f32 1e-06, %v658_v8  ;;  %2542 = vmatpush3.bf16.msra.mxu0 %v788_v60  ;;  %v611_v5 = vmul.f32 0.03125, %v546_v45  ;;  %v612_v7 = vmul.f32 0.03125, %v548_v38 }
 0x150   : > { %v740_v10 = vmul.f32 %v3586_v54, %v718_v17  ;;  %v761_v3 = vadd.f32 %v3604_v56, %v739_v62  ;;  %v2754_v60 = vld [vmem:[#allocation3 + $0x20] sm:$0xff]   ;;  %v2756_v44 = vld [vmem:[#allocation3 + $0x30] sm:$0xff]  }
 0x151   : > { %2806 = vrsqrt.f32 %v689_v9  ;;  %v643_v27 = vmul.f32 %v611_v5, %v611_v5  ;;  %v644_v30 = vmul.f32 %v612_v7, %v612_v7  ;;  %v675_v24 = vsub.f32 %v3468_v28, %v611_v5  ;;  %v2751_v28 = vld [vmem:[#allocation3 + $0x8] sm:$0xff]   ;;  %v2758_v8 = vld [vmem:[#allocation6] sm:$0xff]  }
 0x152   : > { %2808 = vrsqrt.f32 %v690_v39  ;;  %v594_v19 = vpop.xlane.xlu0 %593  ;;  %v596_v22 = vpop.xlane.xlu1 %595  ;;  %v762_v23 = vadd.f32 %v3604_v56, %v740_v10  ;;  %v676_v51 = vsub.f32 %v3471_v29, %v612_v7  ;;  %v2753_v29 = vld [vmem:[#allocation3 + $0x18] sm:$0xff]   ;;  %2583 = vmatprep.mubr.bf16.mxu1 %v2758_v8 }
 0x153   : > { %v2803_v26 = vpop.eup %2802  ;;  %v627_v0 = vmul.f32 0.03125, %v594_v19  ;;  %v628_v61 = vmul.f32 0.03125, %v596_v22 }
 0x154   : > { %v2805_v4 = vpop.eup %2804  ;;  %v789_v6 = vpack.c.bf16 %v762_v23, %v761_v3  ;;  %v719_v31 = vmul.f32 %v2803_v26, %v671_v11 }
 0x155   : > { %v659_v32 = vsub.f32 %v627_v0, %v643_v27  ;;  %v660_v33 = vsub.f32 %v628_v61, %v644_v30  ;;  %v720_v34 = vmul.f32 %v2805_v4, %v672_v14 }
 0x156   : > { %2543 = vmatprep.subr.bf16.mxu0 %v789_v6  ;;  %v741_v20 = vmul.f32 %v3586_v54, %v719_v31 }
 0x157   : > { %v691_v21 = vadd.f32 1e-06, %v659_v32  ;;  %v692_v15 = vadd.f32 1e-06, %v660_v33  ;;  %2544 = vmatpush3.bf16.msra.mxu0 %v789_v6  ;;  %v742_v18 = vmul.f32 %v3586_v54, %v720_v34 }
 0x158   : > { %v763_v12 = vadd.f32 %v3604_v56, %v741_v20 }
 0x159   : > { %2810 = vrsqrt.f32 %v691_v21  ;;  %v764_v63 = vadd.f32 %v3604_v56, %v742_v18 }
 0x15a   : > { %2812 = vrsqrt.f32 %v692_v15  ;;  %v812_v7 = vpop.permute.xlu0 %811 }
 0x15b   : > { %v2807_v13 = vpop.eup %2806  ;;  %v790_v36 = vpack.c.bf16 %v764_v63, %v763_v12 }
 0x15c   : > { %v2809_v37 = vpop.eup %2808  ;;  %v721_v40 = vmul.f32 %v2807_v13, %v673_v35 }
 0x15d   : > { %2545 = vmatprep.subr.bf16.mxu0 %v790_v36  ;;  %v722_v41 = vmul.f32 %v2809_v37, %v674_v2 }
 0x15e   : > { %2546 = vmatpush3.bf16.msra.mxu0 %v790_v36  ;;  %v743_v46 = vmul.f32 %v3586_v54, %v721_v40  ;;  %v857_v33 = vpop.permute.xlu0 %856 }
 0x15f   : > { %v744_v47 = vmul.f32 %v3586_v54, %v722_v41 }
 0x160   : > { %v765_v48 = vadd.f32 %v3604_v56, %v743_v46 }
 0x161   : > { %v766_v49 = vadd.f32 %v3604_v56, %v744_v47 }
 0x163   : > { %v2811_v42 = vpop.eup %2810  ;;  %v791_v25 = vpack.c.bf16 %v766_v49, %v765_v48 }
 0x164   : > { %v2813_v43 = vpop.eup %2812  ;;  %v723_v52 = vmul.f32 %v2811_v42, %v675_v24 }
 0x165   : > { %2547 = vmatprep.subr.bf16.mxu0 %v791_v25  ;;  %v724_v1 = vmul.f32 %v2813_v43, %v676_v51 }
 0x166   : > { %2548 = vmatpush3.bf16.msra.mxu0 %v791_v25  ;;  %v745_v50 = vmul.f32 %v3586_v54, %v723_v52 }
 0x167   : > { %v746_v53 = vmul.f32 %v3586_v54, %v724_v1  ;;  %v2757_v54 = vld [vmem:[#allocation3 + $0x38] sm:$0xff]  }
 0x168   : > { %v767_v55 = vadd.f32 %v3604_v56, %v745_v50 }
 0x169   : > { %v768_v57 = vadd.f32 %v3604_v56, %v746_v53  ;;  %v817_v56 = vpop.permute.xlu1 %816  ;;  %v867_v53 = vpop.permute.xlu0 %866 }
 0x16b   : > { %v792_v58 = vpack.c.bf16 %v768_v57, %v767_v55 }
 0x16d   : > { %2549 = vmatprep.subr.bf16.mxu0 %v792_v58  ;;  %v822_v17 = vpop.permute.xlu1 %821 }
 0x16e   : > { %2550 = vmatpush3.bf16.msra.mxu0 %v792_v58 }
 0x171   : > { %2552 = vmatmul.mubr.bf16.vlgmr.msra.gmra.mrb[0].mxu0 %v2751_v28  ;;  %v827_v45 = vpop.permute.xlu1 %826 }
 0x172   : > { %2555 = vmatprep.mubr.bf16.mxu0 %v2752_v59 }
 0x175   : > { %v832_v38 = vpop.permute.xlu1 %831 }
 0x179   : > { %2556 = vmatmul.mubr.bf16.gmra.mrb[4].mxu0 %v2753_v29  ;;  %v837_v62 = vpop.permute.xlu1 %836 }
 0x17a   : > { %2559 = vmatprep.mubr.bf16.mxu0 %v2754_v60 }
 0x17d   : > { %v842_v9 = vpop.permute.xlu1 %841 }
 0x181   : > { %2560 = vmatmul.mubr.bf16.gmra.mrb[8].mxu0 %v2755_v16  ;;  %v847_v39 = vpop.permute.xlu1 %846 }
 0x182   : > { %2563 = vmatprep.mubr.bf16.mxu0 %v2756_v44 }
 0x185   : > { %v852_v61 = vpop.permute.xlu1 %851 }
 0x189   : > { %2564 = vmatmul.mubr.bf16.gmra.mrb[12].mxu0 %v2757_v54  ;;  %v862_v24 = vpop.permute.xlu1 %861 }
 0x244   : > { %v2553_v5 = vpop.f32.mrb[0].mxu0 }
 0x245   : > { %v980_v10 = vadd.f32 %v2553_v5, %v822_v17  ;;  %v971_v3 = vpop.f32.mrb[1].mxu0 }
 0x246   : > { %v972_v11 = vadd.f32 %v971_v3, %v812_v7  ;;  %v2554_v14 = vpop.f32.mrb[2].mxu0 }
 0x247   : > { %v1052_v19 = vmul.f32 %v980_v10, %v980_v10  ;;  %v983_v22 = vadd.f32 %v2554_v14, %v827_v45  ;;  %v974_v23 = vpop.f32.mrb[3].mxu0  ;;  %v3705_v35 = vmul.f32 0.5, %v980_v10 }
 0x248   : > { %v1050_v26 = vmul.f32 %v972_v11, %v972_v11  ;;  %v975_v27 = vadd.f32 %v974_v23, %v817_v56  ;;  %v3707_v40 = vmul.f32 0.5, %v972_v11  ;;  %v877_v23 = vpop.permute.xlu0 %876 }
 0x249   : > { %v1068_v30 = vmul.f32 %v1052_v19, %v980_v10  ;;  %v1053_v0 = vmul.f32 %v983_v22, %v983_v22  ;;  %v3717_v29 = vmul.f32 0.5, %v983_v22 }
 0x24a   : > { %v1066_v4 = vmul.f32 %v1050_v26, %v972_v11  ;;  %v1051_v6 = vmul.f32 %v975_v27, %v975_v27  ;;  %v3719_v54 = vmul.f32 0.5, %v975_v27 }
 0x24b   : > { %v1084_v31 = vmul.f32 0.044715, %v1068_v30  ;;  %v1069_v32 = vmul.f32 %v1053_v0, %v983_v22 }
 0x24c   : > { %v1082_v34 = vmul.f32 0.044715, %v1066_v4  ;;  %v1067_v20 = vmul.f32 %v1051_v6, %v975_v27  ;;  %v2557_v21 = vpop.f32.mrb[4].mxu0 }
 0x24d   : > { %v1100_v15 = vadd.f32 %v1084_v31, %v980_v10  ;;  %v1085_v18 = vmul.f32 0.044715, %v1069_v32  ;;  %v3703_v12 = vadd.f32 %v2557_v21, %v842_v9  ;;  %v987_v63 = vpop.f32.mrb[5].mxu0 }
 0x24e   : > { %v1098_v13 = vadd.f32 %v1082_v34, %v972_v11  ;;  %v1083_v2 = vmul.f32 0.044715, %v1067_v20  ;;  %v988_v36 = vadd.f32 %v987_v63, %v832_v38  ;;  %v2558_v37 = vpop.f32.mrb[6].mxu0 }
 0x24f   : > { %v1116_v41 = vmul.f32 0.7978846, %v1100_v15  ;;  %v1101_v46 = vadd.f32 %v1085_v18, %v983_v22  ;;  %v1056_v47 = vmul.f32 %v3703_v12, %v3703_v12  ;;  %v3711_v48 = vadd.f32 %v2558_v37, %v847_v39  ;;  %v990_v49 = vpop.f32.mrb[7].mxu0 }
 0x250   : > { %v1099_v42 = vadd.f32 %v1083_v2, %v975_v27  ;;  %v1054_v51 = vmul.f32 %v988_v36, %v988_v36  ;;  %v991_v25 = vadd.f32 %v990_v49, %v837_v62  ;;  %v1114_v43 = vmul.f32 0.7978846, %v1098_v13  ;;  %v872_v62 = vpop.permute.xlu1 %871 }
 0x251   : > { %2814 = vtanh.f32 %v1116_v41  ;;  %v1117_v52 = vmul.f32 0.7978846, %v1101_v46  ;;  %v1072_v1 = vmul.f32 %v1056_v47, %v3703_v12  ;;  %v1057_v50 = vmul.f32 %v3711_v48, %v3711_v48 }
 0x252   : > { %v1070_v55 = vmul.f32 %v1054_v51, %v988_v36  ;;  %v1055_v57 = vmul.f32 %v991_v25, %v991_v25  ;;  %v1115_v58 = vmul.f32 0.7978846, %v1099_v42  ;;  %2816 = vtanh.f32 %v1114_v43  ;;  %v887_v51 = vpop.permute.xlu0 %886 }
 0x253   : > { %2818 = vtanh.f32 %v1117_v52  ;;  %v1088_v28 = vmul.f32 0.044715, %v1072_v1  ;;  %v1073_v59 = vmul.f32 %v1057_v50, %v3711_v48  ;;  %v3721_v8 = vmul.f32 0.5, %v988_v36 }
 0x254   : > { %v1086_v60 = vmul.f32 0.044715, %v1070_v55  ;;  %v1071_v16 = vmul.f32 %v1055_v57, %v991_v25  ;;  %v2561_v44 = vpop.f32.mrb[8].mxu0  ;;  %2820 = vtanh.f32 %v1115_v58  ;;  %v3728_v10 = vmul.f32 0.5, %v991_v25  ;;  %v882_v63 = vpop.permute.xlu1 %881 }
 0x255   : > { %v1104_v56 = vadd.f32 %v1088_v28, %v3703_v12  ;;  %v1089_v17 = vmul.f32 0.044715, %v1073_v59  ;;  %v3724_v45 = vadd.f32 %v2561_v44, %v862_v24  ;;  %v1003_v38 = vpop.f32.mrb[9].mxu0  ;;  %v3747_v15 = vmul.f32 0.5, %v3703_v12 }
 0x256   : > { %v1102_v9 = vadd.f32 %v1086_v60, %v988_v36  ;;  %v1087_v39 = vmul.f32 0.044715, %v1071_v16  ;;  %v3726_v5 = vadd.f32 %v1003_v38, %v852_v61  ;;  %v2562_v7 = vpop.f32.mrb[10].mxu0 }
 0x257   : > { %v1120_v3 = vmul.f32 0.7978846, %v1104_v56  ;;  %v1105_v11 = vadd.f32 %v1089_v17, %v3711_v48  ;;  %v1060_v14 = vmul.f32 %v3724_v45, %v3724_v45  ;;  %v3733_v19 = vadd.f32 %v2562_v7, %v867_v53  ;;  %v1006_v22 = vpop.f32.mrb[11].mxu0 }
 0x258   : > { %v1118_v26 = vmul.f32 0.7978846, %v1102_v9  ;;  %v1103_v27 = vadd.f32 %v1087_v39, %v991_v25  ;;  %v1058_v30 = vmul.f32 %v3726_v5, %v3726_v5  ;;  %v3737_v0 = vadd.f32 %v1006_v22, %v857_v33 }
 0x259   : > { %2822 = vtanh.f32 %v1120_v3  ;;  %v1121_v61 = vmul.f32 0.7978846, %v1105_v11  ;;  %v1076_v4 = vmul.f32 %v1060_v14, %v3724_v45  ;;  %v1061_v6 = vmul.f32 %v3733_v19, %v3733_v19 }
 0x25a   : > { %2824 = vtanh.f32 %v1118_v26  ;;  %v1119_v31 = vmul.f32 0.7978846, %v1103_v27  ;;  %v1074_v32 = vmul.f32 %v1058_v30, %v3726_v5  ;;  %v1059_v34 = vmul.f32 %v3737_v0, %v3737_v0 }
 0x25b   : > { %v2815_v20 = vpop.eup %2814  ;;  %2826 = vtanh.f32 %v1121_v61  ;;  %v1092_v21 = vmul.f32 0.044715, %v1076_v4  ;;  %v1077_v33 = vmul.f32 %v1061_v6, %v3733_v19 }
 0x25c   : > { %v2817_v18 = vpop.eup %2816  ;;  %2828 = vtanh.f32 %v1119_v31  ;;  %v1090_v13 = vmul.f32 0.044715, %v1074_v32  ;;  %v1075_v2 = vmul.f32 %v1059_v34, %v3737_v0  ;;  %v2565_v36 = vpop.f32.mrb[12].mxu0  ;;  %v1148_v37 = vadd.f32 1.0, %v2815_v20 }
 0x25d   : > { %v2819_v41 = vpop.eup %2818  ;;  %v1108_v46 = vadd.f32 %v1092_v21, %v3724_v45  ;;  %v1093_v47 = vmul.f32 0.044715, %v1077_v33  ;;  %v3751_v49 = vadd.f32 %v2565_v36, %v882_v63  ;;  %v1019_v24 = vpop.f32.mrb[13].mxu0  ;;  %v1146_v42 = vadd.f32 1.0, %v2817_v18 }
 0x25e   : > { %v1106_v12 = vadd.f32 %v1090_v13, %v3726_v5  ;;  %v1091_v25 = vmul.f32 0.044715, %v1075_v2  ;;  %v3754_v43 = vadd.f32 %v1019_v24, %v872_v62  ;;  %v2566_v52 = vpop.f32.mrb[14].mxu0  ;;  %v1149_v1 = vadd.f32 1.0, %v2819_v41  ;;  %v2821_v50 = vpop.eup %2820 }
 0x25f   : > { %v1124_v53 = vmul.f32 0.7978846, %v1108_v46  ;;  %v1109_v55 = vadd.f32 %v1093_v47, %v3733_v19  ;;  %v1064_v57 = vmul.f32 %v3751_v49, %v3751_v49  ;;  %v3759_v58 = vadd.f32 %v2566_v52, %v887_v51  ;;  %v1022_v28 = vpop.f32.mrb[15].mxu0 }
 0x260   : > { %v1122_v59 = vmul.f32 0.7978846, %v1106_v12  ;;  %v1107_v60 = vadd.f32 %v1091_v25, %v3737_v0  ;;  %v1062_v16 = vmul.f32 %v3754_v43, %v3754_v43  ;;  %v3764_v44 = vadd.f32 %v1022_v28, %v877_v23 }
 0x261   : > { %2830 = vtanh.f32 %v1124_v53  ;;  %v1125_v56 = vmul.f32 0.7978846, %v1109_v55  ;;  %v1080_v17 = vmul.f32 %v1064_v57, %v3751_v49  ;;  %v1065_v38 = vmul.f32 %v3759_v58, %v3759_v58 }
 0x262   : > { %2832 = vtanh.f32 %v1122_v59  ;;  %v1123_v62 = vmul.f32 0.7978846, %v1107_v60  ;;  %v1078_v9 = vmul.f32 %v1062_v16, %v3754_v43  ;;  %v1063_v39 = vmul.f32 %v3764_v44, %v3764_v44 }
 0x263   : > { %v2823_v7 = vpop.eup %2822  ;;  %2834 = vtanh.f32 %v1125_v56  ;;  %v1096_v3 = vmul.f32 0.044715, %v1080_v17  ;;  %v1081_v11 = vmul.f32 %v1065_v38, %v3759_v58  ;;  %v1147_v14 = vadd.f32 1.0, %v2821_v50 }
 0x264   : > { %v2825_v22 = vpop.eup %2824  ;;  %2836 = vtanh.f32 %v1123_v62  ;;  %v1094_v23 = vmul.f32 0.044715, %v1078_v9  ;;  %v1079_v26 = vmul.f32 %v1063_v39, %v3764_v44  ;;  %v1162_v27 = vmul.f32 %v1146_v42, %v3707_v40 }
 0x265   : > { %v2827_v30 = vpop.eup %2826  ;;  %v1112_v61 = vadd.f32 %v1096_v3, %v3751_v49  ;;  %v1097_v4 = vmul.f32 0.044715, %v1081_v11  ;;  %v1163_v6 = vmul.f32 %v1147_v14, %v3719_v54  ;;  %v1164_v31 = vmul.f32 %v1148_v37, %v3705_v35 }
 0x266   : > { %v2829_v32 = vpop.eup %2828  ;;  %v1110_v34 = vadd.f32 %v1094_v23, %v3754_v43  ;;  %v1095_v20 = vmul.f32 0.044715, %v1079_v26  ;;  %v1165_v21 = vmul.f32 %v1149_v1, %v3717_v29  ;;  %v1150_v33 = vadd.f32 1.0, %v2825_v22 }
 0x267   : > { %v1128_v18 = vmul.f32 0.7978846, %v1112_v61  ;;  %v1113_v63 = vadd.f32 %v1097_v4, %v3759_v58  ;;  %v1194_v13 = vpack.c.bf16 %v1163_v6, %v1162_v27  ;;  %v1151_v40 = vadd.f32 1.0, %v2829_v32  ;;  %v2764_v32 = vld [vmem:[#allocation6 + $0x30] sm:$0xff]  }
 0x268   : > { %v1126_v2 = vmul.f32 0.7978846, %v1110_v34  ;;  %v1111_v36 = vadd.f32 %v1095_v20, %v3764_v44  ;;  %v1195_v41 = vpack.c.bf16 %v1165_v21, %v1164_v31  ;;  %v1166_v54 = vmul.f32 %v1150_v33, %v3721_v8  ;;  %v2763_v31 = vld [vmem:[#allocation6 + $0x28] sm:$0xff]   ;;  %v2765_v34 = vld [vmem:[#allocation6 + $0x38] sm:$0xff]   ;;  %v1221_v21 = vpop.permute.xlu1 %1220  ;;  %v1226_v33 = vpop.permute.xlu0 %1225 }
 0x269   : > { %2838 = vtanh.f32 %v1128_v18  ;;  %v1129_v35 = vmul.f32 0.7978846, %v1113_v63  ;;  %2567 = vmatprep.subr.bf16.mxu1 %v1194_v13  ;;  %v1167_v37 = vmul.f32 %v1151_v40, %v3728_v10  ;;  %v1152_v46 = vadd.f32 1.0, %v2823_v7 }
 0x26a   : > { %2840 = vtanh.f32 %v1126_v2  ;;  %v1127_v29 = vmul.f32 0.7978846, %v1111_v36  ;;  %2568 = vmatpush3.bf16.msra.mxu1 %v1194_v13  ;;  %v1041_v47 = vmul.f32 0.5, %v3711_v48  ;;  %v1153_v24 = vadd.f32 1.0, %v2827_v30 }
 0x26b   : > { %v2831_v42 = vpop.eup %2830  ;;  %2842 = vtanh.f32 %v1129_v35  ;;  %2569 = vmatprep.subr.bf16.mxu1 %v1195_v41  ;;  %v1196_v51 = vpack.c.bf16 %v1167_v37, %v1166_v54  ;;  %v1168_v8 = vmul.f32 %v1152_v46, %v3747_v15  ;;  %v1044_v55 = vmul.f32 0.5, %v3724_v45 }
 0x26c   : > { %v2833_v12 = vpop.eup %2832  ;;  %2844 = vtanh.f32 %v1127_v29  ;;  %v1169_v25 = vmul.f32 %v1153_v24, %v1041_v47  ;;  %v1156_v52 = vadd.f32 1.0, %v2831_v42  ;;  %v1045_v48 = vmul.f32 0.5, %v3733_v19  ;;  %v1231_v63 = vpop.permute.xlu1 %1230  ;;  %v2910_v29 = vld [vmem:[%s3381_s14 + $0x10] sm:$0xff]  ;;  %v2911_v42 = vld [vmem:[%s3381_s14] sm:$0xff] }
 0x26d   : > { %v2835_v1 = vpop.eup %2834  ;;  %v1154_v50 = vadd.f32 1.0, %v2833_v12  ;;  %v1042_v28 = vmul.f32 0.5, %v3726_v5  ;;  %v1043_v59 = vmul.f32 0.5, %v3737_v0  ;;  %v1048_v5 = vmul.f32 0.5, %v3751_v49  ;;  %v2759_v49 = vld [vmem:[#allocation6 + $0x8] sm:$0xff]   ;;  %v1236_v40 = vpop.permute.xlu0 %1235 }
 0x26e   : > { %v2837_v10 = vpop.eup %2836  ;;  %2570 = vmatpush3.bf16.msra.mxu1 %v1195_v41  ;;  %v1197_v53 = vpack.c.bf16 %v1169_v25, %v1168_v8  ;;  %v1157_v57 = vadd.f32 1.0, %v2835_v1  ;;  %v1172_v16 = vmul.f32 %v1156_v52, %v1044_v55  ;;  %v1049_v0 = vmul.f32 0.5, %v3759_v58  ;;  %v2760_v58 = vld [vmem:[#allocation6 + $0x10] sm:$0xff]  }
 0x26f   : > { %2571 = vmatprep.subr.bf16.mxu1 %v1196_v51  ;;  %v1155_v60 = vadd.f32 1.0, %v2837_v10  ;;  %v1170_v56 = vmul.f32 %v1154_v50, %v1042_v28  ;;  %v1046_v14 = vmul.f32 0.5, %v3754_v43  ;;  %v1047_v22 = vmul.f32 0.5, %v3764_v44  ;;  %v2761_v43 = vld [vmem:[#allocation6 + $0x18] sm:$0xff]   ;;  %v2762_v44 = vld [vmem:[#allocation6 + $0x20] sm:$0xff]  }
 0x270   : > { %v1173_v15 = vmul.f32 %v1157_v57, %v1045_v48  ;;  %v1443_v20 = vlaneseq  ;;  %v1241_v8 = vpop.permute.xlu1 %1240  ;;  %v2912_v10 = vld [vmem:[%s3381_s14 + $0x18] sm:$0xff] }
 0x271   : > { %v1171_v17 = vmul.f32 %v1155_v60, %v1043_v59  ;;  %v1246_v52 = vpop.permute.xlu0 %1245  ;;  %v2913_v60 = vld [vmem:[%s3381_s14 + $0x8] sm:$0xff] }
 0x272   : > { %2572 = vmatpush3.bf16.msra.mxu1 %v1196_v51  ;;  %v1199_v38 = vpack.c.bf16 %v1173_v15, %v1172_v16  ;;  %v3794_v18 = vand.u32 127, %v1443_v20 }
 0x273   : > { %v2839_v62 = vpop.eup %2838  ;;  %2573 = vmatprep.subr.bf16.mxu1 %v1197_v53  ;;  %v1198_v9 = vpack.c.bf16 %v1171_v17, %v1170_v56 }
 0x274   : > { %v2841_v39 = vpop.eup %2840  ;;  %v1160_v45 = vadd.f32 1.0, %v2839_v62  ;;  %vm1445_vm0 = vcmp.lt.s32.totalorder %v3794_v18, 32  ;;  %v1251_v59 = vpop.permute.xlu1 %1250 }
 0x275   : > { %v2843_v7 = vpop.eup %2842  ;;  %v1158_v19 = vadd.f32 1.0, %v2841_v39  ;;  %v1256_v15 = vpop.permute.xlu0 %1255 }
 0x276   : > { %v2845_v3 = vpop.eup %2844  ;;  %2574 = vmatpush3.bf16.msra.mxu1 %v1197_v53  ;;  %v1161_v11 = vadd.f32 1.0, %v2843_v7  ;;  %v1176_v26 = vmul.f32 %v1160_v45, %v1048_v5 }
 0x277   : > { %2575 = vmatprep.subr.bf16.mxu1 %v1198_v9  ;;  %v1159_v23 = vadd.f32 1.0, %v2845_v3  ;;  %v1174_v30 = vmul.f32 %v1158_v19, %v1046_v14  ;;  %v2914_v14 = vld [vmem:[%s3381_s14 + $0x30] sm:$0xff] }
 0x278   : > { %v1177_v27 = vmul.f32 %v1161_v11, %v1049_v0 }
 0x279   : > { %v1175_v61 = vmul.f32 %v1159_v23, %v1047_v22 }
 0x27a   : > { %2576 = vmatpush3.bf16.msra.mxu1 %v1198_v9  ;;  %v1201_v4 = vpack.c.bf16 %v1177_v27, %v1176_v26  ;;  %v2915_v26 = vld [vmem:[%s3381_s14 + $0x38] sm:$0xff] }
 0x27b   : > { %2577 = vmatprep.subr.bf16.mxu1 %v1199_v38  ;;  %v1200_v6 = vpack.c.bf16 %v1175_v61, %v1174_v30  ;;  %v1261_v30 = vpop.permute.xlu1 %1260 }
 0x27e   : > { %2578 = vmatpush3.bf16.msra.mxu1 %v1199_v38 }
 0x27f   : > { %2579 = vmatprep.subr.bf16.mxu1 %v1200_v6  ;;  %v1271_v20 = vpop.permute.xlu1 %1270 }
 0x282   : > { %2580 = vmatpush3.bf16.msra.mxu1 %v1200_v6  ;;  %v2916_v6 = vld [vmem:[%s3381_s14 + $0x20] sm:$0xff] }
 0x283   : > { %2581 = vmatprep.subr.bf16.mxu1 %v1201_v4 }
 0x286   : > { %2582 = vmatpush3.bf16.msra.mxu1 %v1201_v4  ;;  %v1266_v4 = vpop.permute.xlu0 %1265 }
 0x289   : > { %2584 = vmatmul.mubr.bf16.vlgmr.msra.gmra.mrb[0].mxu1 %v2759_v49 }
 0x28a   : > { %2587 = vmatprep.mubr.bf16.mxu1 %v2760_v58 }
 0x291   : > { %2588 = vmatmul.mubr.bf16.gmra.mrb[4].mxu1 %v2761_v43  ;;  %v2917_v43 = vld [vmem:[%s3381_s14 + $0x28] sm:$0xff] }
 0x292   : > { %2591 = vmatprep.mubr.bf16.mxu1 %v2762_v44 }
 0x299   : > { %2592 = vmatmul.mubr.bf16.gmra.mrb[8].mxu1 %v2763_v31 }
 0x29a   : > { %2595 = vmatprep.mubr.bf16.mxu1 %v2764_v32 }
 0x2a1   : > { %2596 = vmatmul.mubr.bf16.gmra.mrb[12].mxu1 %v2765_v34 }
 0x35c   : > { %v2585_v13 = vpop.f32.mrb[0].mxu1 }
 0x35d   : > { %v1389_v2 = vadd.f32 %v2585_v13, %v1231_v63  ;;  %v1380_v36 = vpop.f32.mrb[1].mxu1 }
 0x35e   : > { %v1381_v41 = vadd.f32 %v1380_v36, %v1221_v21  ;;  %v2586_v54 = vpop.f32.mrb[2].mxu1 }
 0x35f   : > { %v1450_v35 = vsel %vm1445_vm0, %v1389_v2, 0.0  ;;  %v1392_v37 = vadd.f32 %v2586_v54, %v1236_v40  ;;  %v1383_v46 = vpop.f32.mrb[3].mxu1 }
 0x360   : > { %v3800_v47 = vadd.f32 %v2910_v29, %v1450_v35  ;;  %v1448_v24 = vsel %vm1445_vm0, %v1381_v41, 0.0  ;;  %v1384_v12 = vadd.f32 %v1383_v46, %v1226_v33  ;;  %v1276_v33 = vpop.permute.xlu0 %1275  ;;  %v2918_v46 = vld [vmem:[%s3381_s14 + $0x50] sm:$0xff] }
 0x361   : > { %v3805_v51 = vadd.f32 %v2911_v42, %v1448_v24  ;;  %v1451_v25 = vsel %vm1445_vm0, %v1392_v37, 0.0  ;;  %v2919_v42 = vld [vmem:[%s3381_s14 + $0x58] sm:$0xff] }
 0x362   : > { %1518 = vadd.xlane.f32.xlu0 %v3800_v47  ;;  %v1548_v50 = vmul.f32 %v3800_v47, %v3800_v47  ;;  %v3814_v53 = vadd.f32 %v2912_v10, %v1451_v25  ;;  %v1449_v55 = vsel %vm1445_vm0, %v1384_v12, 0.0  ;;  %v2921_v10 = vld [vmem:[%s3381_s14 + $0x48] sm:$0xff] }
 0x363   : > { %1514 = vadd.xlane.f32.xlu1 %v3805_v51  ;;  %v3820_v16 = vadd.f32 %v2913_v60, %v1449_v55  ;;  %v1546_v9 = vmul.f32 %v3805_v51, %v3805_v51 }
 0x364   : > { %v2589_v1 = vpop.f32.mrb[4].mxu1  ;;  %v1549_v17 = vmul.f32 %v3814_v53, %v3814_v53 }
 0x365   : > { %v1396_v48 = vpop.f32.mrb[5].mxu1  ;;  %v1405_v56 = vadd.f32 %v2589_v1, %v1251_v59  ;;  %v1547_v19 = vmul.f32 %v3820_v16, %v3820_v16  ;;  %v2920_v1 = vld [vmem:[%s3381_s14 + $0x40] sm:$0xff] }
 0x366   : > { %v2590_v57 = vpop.f32.mrb[6].mxu1  ;;  %1566 = vadd.xlane.f32.xlu0 %v1548_v50  ;;  %v1397_v45 = vadd.f32 %v1396_v48, %v1241_v8  ;;  %v1281_v8 = vpop.permute.xlu1 %1280  ;;  %v2766_v48 = vld [vmem:[#allocation8] sm:$0xff]  }
 0x367   : > { %v1399_v28 = vpop.f32.mrb[7].mxu1  ;;  %1520 = vadd.xlane.f32.xlu1 %v3814_v53  ;;  %v1408_v38 = vadd.f32 %v2590_v57, %v1256_v15  ;;  %v1454_v39 = vsel %vm1445_vm0, %v1405_v56, 0.0  ;;  %2599 = vmatprep.subr.bf16.mxu0 %v2766_v48  ;;  %v2767_v56 = vld [vmem:[#allocation8 + $0x8] sm:$0xff]  }
 0x368   : > { %v1400_v5 = vadd.f32 %v1399_v28, %v1246_v52  ;;  %v3834_v22 = vadd.f32 %v2914_v14, %v1454_v39  ;;  %v1452_v23 = vsel %vm1445_vm0, %v1397_v45, 0.0  ;;  %v1286_v52 = vpop.permute.xlu0 %1285  ;;  %2600 = vmatpush3.bf16.msra.mxu0 %v2766_v48  ;;  %v2923_v14 = vld [vmem:[%s3381_s14 + $0x78] sm:$0xff] }
 0x369   : > { %v1455_v3 = vsel %vm1445_vm0, %v1408_v38, 0.0  ;;  %v3846_v49 = vadd.f32 %v2916_v6, %v1452_v23  ;;  %v2768_v38 = vld [vmem:[#allocation8 + $0x10] sm:$0xff]   ;;  %2601 = vmatprep.subr.bf16.mxu0 %v2767_v56  ;;  %v2925_v6 = vld [vmem:[%s3381_s14 + $0x68] sm:$0xff] }
 0x36a   : > { %1516 = vadd.xlane.f32.xlu0 %v3820_v16  ;;  %v3839_v27 = vadd.f32 %v2915_v26, %v1455_v3  ;;  %v1453_v61 = vsel %vm1445_vm0, %v1400_v5, 0.0  ;;  %v1552_v21 = vmul.f32 %v3834_v22, %v3834_v22  ;;  %v1291_v57 = vpop.permute.xlu1 %1290  ;;  %v2922_v5 = vld [vmem:[%s3381_s14 + $0x70] sm:$0xff]  ;;  %v2770_v26 = vld [vmem:[#allocation8 + $0x20] sm:$0xff]  }
 0x36b   : > { %1568 = vadd.xlane.f32.xlu1 %v1549_v17  ;;  %v3849_v44 = vadd.f32 %v2917_v43, %v1453_v61  ;;  %v1550_v2 = vmul.f32 %v3846_v49, %v3846_v49  ;;  %v2924_v61 = vld [vmem:[%s3381_s14 + $0x60] sm:$0xff]  ;;  %v2771_v43 = vld [vmem:[#allocation8 + $0x28] sm:$0xff]   ;;  %s4246_s14 = sld [smem:[#allocation24_spill]] }
 0x36c   : > { %v2593_v62 = vpop.f32.mrb[8].mxu1  ;;  %v1553_v13 = vmul.f32 %v3839_v27, %v3839_v27  ;;  %v1296_v59 = vpop.permute.xlu0 %1295  ;;  %2602 = vmatpush3.bf16.msra.mxu0 %v2767_v56 }
 0x36d   : > { %v1412_v7 = vpop.f32.mrb[9].mxu1  ;;  %v1421_v63 = vadd.f32 %v2593_v62, %v1271_v20  ;;  %v1551_v54 = vmul.f32 %v3849_v44, %v3849_v44  ;;  %2603 = vmatprep.subr.bf16.mxu0 %v2768_v38 }
 0x36e   : > { %v2594_v0 = vpop.f32.mrb[10].mxu1  ;;  %1562 = vadd.xlane.f32.xlu0 %v1546_v9  ;;  %v1413_v41 = vadd.f32 %v1412_v7, %v1261_v30  ;;  %v2769_v7 = vld [vmem:[#allocation8 + $0x18] sm:$0xff]  }
 0x36f   : > { %v1415_v11 = vpop.f32.mrb[11].mxu1  ;;  %1564 = vadd.xlane.f32.xlu1 %v1547_v19  ;;  %v1424_v40 = vadd.f32 %v2594_v0, %v1276_v33  ;;  %v1458_v36 = vsel %vm1445_vm0, %v1421_v63, 0.0 }
 0x370   : > { %v1416_v37 = vadd.f32 %v1415_v11, %v1266_v4  ;;  %v3866_v29 = vadd.f32 %v2918_v46, %v1458_v36  ;;  %v1456_v24 = vsel %vm1445_vm0, %v1413_v41, 0.0  ;;  %2604 = vmatpush3.bf16.msra.mxu0 %v2768_v38 }
 0x371   : > { %v1459_v35 = vsel %vm1445_vm0, %v1424_v40, 0.0  ;;  %v3878_v50 = vadd.f32 %v2920_v1, %v1456_v24  ;;  %2605 = vmatprep.subr.bf16.mxu0 %v2769_v7  ;;  %s4146_s21 = scalar_lea.hbm %s4246_s14, %s2470_s17 }
 0x372   : > { %1526 = vadd.xlane.f32.xlu0 %v3834_v22  ;;  %v3871_v12 = vadd.f32 %v2919_v42, %v1459_v35  ;;  %v1457_v25 = vsel %vm1445_vm0, %v1416_v37, 0.0  ;;  %v1556_v28 = vmul.f32 %v3866_v29, %v3866_v29 }
 0x373   : > { %1528 = vadd.xlane.f32.xlu1 %v3839_v27  ;;  %v3881_v55 = vadd.f32 %v2921_v10, %v1457_v25  ;;  %v1554_v62 = vmul.f32 %v3878_v50, %v3878_v50 }
 0x374   : > { %v2597_v58 = vpop.f32.mrb[12].mxu1  ;;  %v1557_v15 = vmul.f32 %v3871_v12, %v3871_v12  ;;  %2606 = vmatpush3.bf16.msra.mxu0 %v2769_v7 }
 0x375   : > { %v1428_v31 = vpop.f32.mrb[13].mxu1  ;;  %v1437_v60 = vadd.f32 %v2597_v58, %v1291_v57  ;;  %v1555_v45 = vmul.f32 %v3881_v55, %v3881_v55  ;;  %2607 = vmatprep.subr.bf16.mxu0 %v2770_v26 }
 0x376   : > { %v2598_v32 = vpop.f32.mrb[14].mxu1  ;;  %1522 = vadd.xlane.f32.xlu0 %v3846_v49  ;;  %v1429_v39 = vadd.f32 %v1428_v31, %v1281_v8 }
 0x377   : > { %v1431_v34 = vpop.f32.mrb[15].mxu1  ;;  %1524 = vadd.xlane.f32.xlu1 %v3849_v44  ;;  %v1440_v17 = vadd.f32 %v2598_v32, %v1296_v59  ;;  %v1462_v9 = vsel %vm1445_vm0, %v1437_v60, 0.0  ;;  %v2772_v32 = vld [vmem:[#allocation8 + $0x30] sm:$0xff]  }
 0x378   : > { %v1432_v3 = vadd.f32 %v1431_v34, %v1286_v52  ;;  %v3898_v0 = vadd.f32 %v2922_v5, %v1462_v9  ;;  %v1460_v11 = vsel %vm1445_vm0, %v1429_v39, 0.0  ;;  %2608 = vmatpush3.bf16.msra.mxu0 %v2770_v26 }
 0x379   : > { %v1463_v19 = vsel %vm1445_vm0, %v1440_v17, 0.0  ;;  %v3910_v4 = vadd.f32 %v2924_v61, %v1460_v11  ;;  %2609 = vmatprep.subr.bf16.mxu0 %v2771_v43 }
 0x37a   : > { %1574 = vadd.xlane.f32.xlu0 %v1552_v21  ;;  %v3903_v23 = vadd.f32 %v2923_v14, %v1463_v19  ;;  %v1461_v30 = vsel %vm1445_vm0, %v1432_v3, 0.0  ;;  %v1560_v34 = vmul.f32 %v3898_v0, %v3898_v0  ;;  %v2773_v21 = vld [vmem:[#allocation8 + $0x38] sm:$0xff]  }
 0x37b   : > { %1576 = vadd.xlane.f32.xlu1 %v1553_v13  ;;  %v3913_v58 = vadd.f32 %v2925_v6, %v1461_v30  ;;  %v1558_v18 = vmul.f32 %v3910_v4, %v3910_v4 }
 0x37c   : > { %2610 = vmatpush3.bf16.msra.mxu0 %v2771_v43  ;;  %v1561_v20 = vmul.f32 %v3903_v23, %v3903_v23 }
 0x37d   : > { %v1559_v31 = vmul.f32 %v3913_v58, %v3913_v58  ;;  %2611 = vmatprep.subr.bf16.mxu0 %v2772_v32 }
 0x37e   : > { %1570 = vadd.xlane.f32.xlu0 %v1550_v2 }
 0x37f   : > { %1572 = vadd.xlane.f32.xlu1 %v1551_v54 }
 0x380   : > { %2612 = vmatpush3.bf16.msra.mxu0 %v2772_v32 }
 0x381   : > { %2613 = vmatprep.subr.bf16.mxu0 %v2773_v21 }
 0x382   : > { %1534 = vadd.xlane.f32.xlu0 %v3866_v29 }
 0x383   : > { %1536 = vadd.xlane.f32.xlu1 %v3871_v12 }
 0x384   : > { %2614 = vmatpush3.bf16.msra.mxu0 %v2773_v21 }
 0x386   : > { %1530 = vadd.xlane.f32.xlu0 %v3878_v50 }
 0x387   : > { %1532 = vadd.xlane.f32.xlu1 %v3881_v55 }
 0x38a   : > { %1582 = vadd.xlane.f32.xlu0 %v1556_v28 }
 0x38b   : > { %1584 = vadd.xlane.f32.xlu1 %v1557_v15 }
 0x38e   : > { %1578 = vadd.xlane.f32.xlu0 %v1554_v62 }
 0x38f   : > { %1580 = vadd.xlane.f32.xlu1 %v1555_v45 }
 0x392   : > { %1542 = vadd.xlane.f32.xlu0 %v3898_v0 }
 0x393   : > { %1544 = vadd.xlane.f32.xlu1 %v3903_v23 }
 0x396   : > { %1538 = vadd.xlane.f32.xlu0 %v3910_v4 }
 0x397   : > { %1540 = vadd.xlane.f32.xlu1 %v3913_v58 }
 0x39a   : > { %1586 = vadd.xlane.f32.xlu0 %v1558_v18 }
 0x39b   : > { %1588 = vadd.xlane.f32.xlu1 %v1559_v31 }
 0x39e   : > { %1590 = vadd.xlane.f32.xlu0 %v1560_v34 }
 0x39f   : > { %1592 = vadd.xlane.f32.xlu1 %v1561_v20 }
 0x3ef   : > { %v1519_v33 = vpop.xlane.xlu0 %1518 }
 0x3f0   : > { %v1596_v63 = vmul.f32 0.03125, %v1519_v33  ;;  %v1515_v13 = vpop.xlane.xlu1 %1514 }
 0x3f1   : > { %v1594_v46 = vmul.f32 0.03125, %v1515_v13 }
 0x3f2   : > { %v1628_v2 = vmul.f32 %v1596_v63, %v1596_v63  ;;  %v1660_v31 = vsub.f32 %v3800_v47, %v1596_v63 }
 0x3f3   : > { %v1567_v40 = vpop.xlane.xlu0 %1566  ;;  %v1626_v48 = vmul.f32 %v1594_v46, %v1594_v46  ;;  %v1658_v33 = vsub.f32 %v3805_v51, %v1594_v46 }
 0x3f4   : > { %v1612_v36 = vmul.f32 0.03125, %v1567_v40  ;;  %v1521_v41 = vpop.xlane.xlu1 %1520 }
 0x3f5   : > { %v1597_v54 = vmul.f32 0.03125, %v1521_v41 }
 0x3f6   : > { %v1644_v35 = vsub.f32 %v1612_v36, %v1628_v2 }
 0x3f7   : > { %v1517_v37 = vpop.xlane.xlu0 %1516  ;;  %v1629_v42 = vmul.f32 %v1597_v54, %v1597_v54  ;;  %v1661_v5 = vsub.f32 %v3814_v53, %v1597_v54 }
 0x3f8   : > { %v1569_v24 = vpop.xlane.xlu1 %1568  ;;  %v1595_v8 = vmul.f32 0.03125, %v1517_v37  ;;  %v1676_v52 = vadd.f32 1e-06, %v1644_v35 }
 0x3f9   : > { %v1613_v25 = vmul.f32 0.03125, %v1569_v24 }
 0x3fa   : > { %v1627_v59 = vmul.f32 %v1595_v8, %v1595_v8  ;;  %2846 = vrsqrt.f32 %v1676_v52  ;;  %v1659_v40 = vsub.f32 %v3820_v16, %v1595_v8 }
 0x3fb   : > { %v1645_v1 = vsub.f32 %v1613_v25, %v1629_v42  ;;  %v1563_v10 = vpop.xlane.xlu0 %1562  ;;  %v3948_v42 = vld [vmem:[%s4204_s7] ss:$0 sm:$0xff] }
 0x3fc   : > { %v1610_v57 = vmul.f32 0.03125, %v1563_v10  ;;  %v1565_v28 = vpop.xlane.xlu1 %1564 }
 0x3fd   : > { %v1677_v60 = vadd.f32 1e-06, %v1645_v1  ;;  %v1611_v15 = vmul.f32 0.03125, %v1565_v28 }
 0x3fe   : > { %v1642_v56 = vsub.f32 %v1610_v57, %v1626_v48 }
 0x3ff   : > { %2848 = vrsqrt.f32 %v1677_v60  ;;  %v1643_v17 = vsub.f32 %v1611_v15, %v1627_v59  ;;  %v1527_v38 = vpop.xlane.xlu0 %1526 }
 0x400   : > { %v1674_v62 = vadd.f32 1e-06, %v1642_v56  ;;  %v1529_v9 = vpop.xlane.xlu1 %1528  ;;  %v3925_v7 = vmul.f32 0.03125, %v1527_v38 }
 0x401   : > { %v1675_v39 = vadd.f32 1e-06, %v1643_v17  ;;  %v3927_v3 = vmul.f32 0.03125, %v1529_v9  ;;  %v3956_v17 = vld [vmem:[%s4205_s8] ss:$0 sm:$0xff] }
 0x402   : > { %2850 = vrsqrt.f32 %v1674_v62  ;;  %v1632_v26 = vmul.f32 %v3925_v7, %v3925_v7 }
 0x403   : > { %2852 = vrsqrt.f32 %v1675_v39  ;;  %v1523_v45 = vpop.xlane.xlu0 %1522  ;;  %v1633_v32 = vmul.f32 %v3927_v3, %v3927_v3 }
 0x404   : > { %v1525_v19 = vpop.xlane.xlu1 %1524  ;;  %v2847_v14 = vpop.eup %2846  ;;  %v3932_v30 = vmul.f32 0.03125, %v1523_v45 }
 0x405   : > { %v3934_v61 = vmul.f32 0.03125, %v1525_v19  ;;  %v1708_v13 = vmul.f32 %v2847_v14, %v1660_v31 }
 0x406   : > { %v1630_v54 = vmul.f32 %v3932_v30, %v3932_v30 }
 0x407   : > { %v1575_v11 = vpop.xlane.xlu0 %1574  ;;  %v1631_v63 = vmul.f32 %v3934_v61, %v3934_v61  ;;  %v1730_v60 = vmul.f32 %v3948_v42, %v1708_v13 }
 0x408   : > { %v1616_v6 = vmul.f32 0.03125, %v1575_v11  ;;  %v1577_v43 = vpop.xlane.xlu1 %1576 }
 0x409   : > { %v2849_v18 = vpop.eup %2848  ;;  %v1617_v34 = vmul.f32 0.03125, %v1577_v43 }
 0x40a   : > { %v1709_v20 = vmul.f32 %v2849_v18, %v1661_v5  ;;  %v1648_v21 = vsub.f32 %v1616_v6, %v1632_v26  ;;  %v1752_v5 = vadd.f32 %v3956_v17, %v1730_v60  ;;  %v1664_v18 = vsub.f32 %v3834_v22, %v3925_v7 }
 0x40b   : > { %v1649_v2 = vsub.f32 %v1617_v34, %v1633_v32  ;;  %v1571_v36 = vpop.xlane.xlu0 %1570 }
 0x40c   : > { %v2851_v41 = vpop.eup %2850  ;;  %v1680_v35 = vadd.f32 1e-06, %v1648_v21  ;;  %v1614_v37 = vmul.f32 0.03125, %v1571_v36  ;;  %v1573_v24 = vpop.xlane.xlu1 %1572  ;;  %v1731_v1 = vmul.f32 %v3948_v42, %v1709_v20  ;;  %v1665_v20 = vsub.f32 %v3839_v27, %v3927_v3 }
 0x40d   : > { %v2853_v46 = vpop.eup %2852  ;;  %v1681_v25 = vadd.f32 1e-06, %v1649_v2  ;;  %v1615_v8 = vmul.f32 0.03125, %v1573_v24  ;;  %v1706_v52 = vmul.f32 %v2851_v41, %v1658_v33  ;;  %v1663_v3 = vsub.f32 %v3849_v44, %v3934_v61 }
 0x40e   : > { %2854 = vrsqrt.f32 %v1680_v35  ;;  %v1646_v10 = vsub.f32 %v1614_v37, %v1630_v54  ;;  %v1707_v48 = vmul.f32 %v2853_v46, %v1659_v40  ;;  %v1753_v39 = vadd.f32 %v3956_v17, %v1731_v1 }
 0x40f   : > { %2856 = vrsqrt.f32 %v1681_v25  ;;  %v1647_v57 = vsub.f32 %v1615_v8, %v1631_v63  ;;  %v1535_v28 = vpop.xlane.xlu0 %1534  ;;  %v1728_v59 = vmul.f32 %v3948_v42, %v1706_v52  ;;  %v1662_v35 = vsub.f32 %v3846_v49, %v3932_v30 }
 0x410   : > { %v1678_v15 = vadd.f32 1e-06, %v1646_v10  ;;  %v1537_v56 = vpop.xlane.xlu1 %1536  ;;  %v1729_v38 = vmul.f32 %v3948_v42, %v1707_v48  ;;  %v3963_v11 = vmul.f32 0.03125, %v1535_v28  ;;  %v1767_v43 = vpack.c.bf16 %v1753_v39, %v1752_v5 }
 0x411   : > { %v1679_v62 = vadd.f32 1e-06, %v1647_v57  ;;  %v1750_v9 = vadd.f32 %v3956_v17, %v1728_v59  ;;  %v3965_v6 = vmul.f32 0.03125, %v1537_v56 }
 0x412   : > { %2858 = vrsqrt.f32 %v1678_v15  ;;  %v1751_v45 = vadd.f32 %v3956_v17, %v1729_v38  ;;  %v1636_v21 = vmul.f32 %v3963_v11, %v3963_v11 }
 0x413   : > { %2860 = vrsqrt.f32 %v1679_v62  ;;  %v1531_v19 = vpop.xlane.xlu0 %1530  ;;  %v1637_v36 = vmul.f32 %v3965_v6, %v3965_v6 }
 0x414   : > { %v1533_v14 = vpop.xlane.xlu1 %1532  ;;  %v1766_v26 = vpack.c.bf16 %v1751_v45, %v1750_v9  ;;  %v3969_v31 = vmul.f32 0.03125, %v1531_v19 }
 0x415   : > { %v3975_v33 = vmul.f32 0.03125, %v1533_v14 }
 0x416   : > { %2615 = vmatprep.mubr.bf16.mxu0 %v1766_v26  ;;  %v1634_v37 = vmul.f32 %v3969_v31, %v3969_v31 }
 0x417   : > { %v1583_v32 = vpop.xlane.xlu0 %1582  ;;  %2616 = vmatmul.mubr.bf16.vlgmr.msra.gmra.mrb[16].mxu0 %v1767_v43  ;;  %v1635_v8 = vmul.f32 %v3975_v33, %v3975_v33 }
 0x418   : > { %v2855_v34 = vpop.eup %2854  ;;  %v1620_v13 = vmul.f32 0.03125, %v1583_v32  ;;  %v1585_v40 = vpop.xlane.xlu1 %1584 }
 0x419   : > { %v2857_v2 = vpop.eup %2856  ;;  %v1621_v7 = vmul.f32 0.03125, %v1585_v40  ;;  %v1712_v41 = vmul.f32 %v2855_v34, %v1664_v18  ;;  %v1668_v40 = vsub.f32 %v3866_v29, %v3963_v11  ;;  %v1666_v11 = vsub.f32 %v3878_v50, %v3969_v31 }
 0x41a   : > { %v1652_v54 = vsub.f32 %v1620_v13, %v1636_v21  ;;  %v1713_v63 = vmul.f32 %v2857_v2, %v1665_v20 }
 0x41b   : > { %v1653_v24 = vsub.f32 %v1621_v7, %v1637_v36  ;;  %v1579_v46 = vpop.xlane.xlu0 %1578  ;;  %v1734_v48 = vmul.f32 %v3948_v42, %v1712_v41  ;;  %v1669_v41 = vsub.f32 %v3871_v12, %v3965_v6 }
 0x41c   : > { %v2859_v25 = vpop.eup %2858  ;;  %v1684_v52 = vadd.f32 1e-06, %v1652_v54  ;;  %v1618_v1 = vmul.f32 0.03125, %v1579_v46  ;;  %v1581_v10 = vpop.xlane.xlu1 %1580  ;;  %v1735_v61 = vmul.f32 %v3948_v42, %v1713_v63 }
 0x41d   : > { %v2861_v57 = vpop.eup %2860  ;;  %v1685_v28 = vadd.f32 1e-06, %v1653_v24  ;;  %v1619_v30 = vmul.f32 0.03125, %v1581_v10  ;;  %v1710_v59 = vmul.f32 %v2859_v25, %v1662_v35  ;;  %v1756_v14 = vadd.f32 %v3956_v17, %v1734_v48 }
 0x41e   : > { %2862 = vrsqrt.f32 %v1684_v52  ;;  %v1650_v60 = vsub.f32 %v1618_v1, %v1634_v37  ;;  %v1711_v15 = vmul.f32 %v2861_v57, %v1663_v3  ;;  %v1757_v26 = vadd.f32 %v3956_v17, %v1735_v61 }
 0x41f   : > { %2864 = vrsqrt.f32 %v1685_v28  ;;  %v1651_v56 = vsub.f32 %v1619_v30, %v1635_v8  ;;  %v1543_v38 = vpop.xlane.xlu0 %1542  ;;  %v1732_v62 = vmul.f32 %v3948_v42, %v1710_v59  ;;  %v1667_v1 = vsub.f32 %v3881_v55, %v3975_v33 }
 0x420   : > { %v1682_v9 = vadd.f32 1e-06, %v1650_v60  ;;  %v1545_v39 = vpop.xlane.xlu1 %1544  ;;  %v1733_v45 = vmul.f32 %v3948_v42, %v1711_v15  ;;  %v1769_v13 = vpack.c.bf16 %v1757_v26, %v1756_v14  ;;  %v3997_v2 = vmul.f32 0.03125, %v1543_v38 }
 0x421   : > { %v1683_v19 = vadd.f32 1e-06, %v1651_v56  ;;  %v1754_v5 = vadd.f32 %v3956_v17, %v1732_v62  ;;  %v1609_v54 = vmul.f32 0.03125, %v1545_v39 }
 0x422   : > { %2866 = vrsqrt.f32 %v1682_v9  ;;  %v1755_v43 = vadd.f32 %v3956_v17, %v1733_v45  ;;  %v1640_v10 = vmul.f32 %v3997_v2, %v3997_v2 }
 0x423   : > { %2868 = vrsqrt.f32 %v1683_v19  ;;  %v1539_v18 = vpop.xlane.xlu0 %1538  ;;  %v1641_v28 = vmul.f32 %v1609_v54, %v1609_v54 }
 0x424   : > { %v1606_v32 = vmul.f32 0.03125, %v1539_v18  ;;  %v1541_v34 = vpop.xlane.xlu1 %1540  ;;  %v1768_v20 = vpack.c.bf16 %v1755_v43, %v1754_v5 }
 0x425   : > { %v1607_v21 = vmul.f32 0.03125, %v1541_v34 }
 0x426   : > { %2619 = vmatprep.mubr.bf16.mxu0 %v1768_v20  ;;  %v1638_v63 = vmul.f32 %v1606_v32, %v1606_v32 }
 0x427   : > { %v1587_v36 = vpop.xlane.xlu0 %1586  ;;  %2620 = vmatmul.mubr.bf16.gmra.mrb[20].mxu0 %v1769_v13  ;;  %v1639_v24 = vmul.f32 %v1607_v21, %v1607_v21 }
 0x428   : > { %v2863_v7 = vpop.eup %2862  ;;  %v1622_v35 = vmul.f32 0.03125, %v1587_v36  ;;  %v1589_v3 = vpop.xlane.xlu1 %1588 }
 0x429   : > { %v2865_v37 = vpop.eup %2864  ;;  %v1623_v46 = vmul.f32 0.03125, %v1589_v3  ;;  %v1716_v25 = vmul.f32 %v2863_v7, %v1668_v40  ;;  %v1670_v40 = vsub.f32 %v3910_v4, %v1606_v32  ;;  %v1671_v7 = vsub.f32 %v3913_v58, %v1607_v21 }
 0x42a   : > { %v1654_v8 = vsub.f32 %v1622_v35, %v1638_v63  ;;  %v1717_v52 = vmul.f32 %v2865_v37, %v1669_v41  ;;  %v1672_v3 = vsub.f32 %v3898_v0, %v3997_v2 }
 0x42b   : > { %v1655_v6 = vsub.f32 %v1623_v46, %v1639_v24  ;;  %v1591_v48 = vpop.xlane.xlu0 %1590  ;;  %v1738_v60 = vmul.f32 %v3948_v42, %v1716_v25  ;;  %v1673_v46 = vsub.f32 %v3903_v23, %v1609_v54 }
 0x42c   : > { %v2867_v57 = vpop.eup %2866  ;;  %v1686_v30 = vadd.f32 1e-06, %v1654_v8  ;;  %v1624_v59 = vmul.f32 0.03125, %v1591_v48  ;;  %v1593_v61 = vpop.xlane.xlu1 %1592  ;;  %v1739_v31 = vmul.f32 %v3948_v42, %v1717_v52 }
 0x42d   : > { %v2869_v15 = vpop.eup %2868  ;;  %v1687_v56 = vadd.f32 1e-06, %v1655_v6  ;;  %v1625_v38 = vmul.f32 0.03125, %v1593_v61  ;;  %v1714_v62 = vmul.f32 %v2867_v57, %v1666_v11  ;;  %v1760_v43 = vadd.f32 %v3956_v17, %v1738_v60  ;;  %v2774_v57 = vld [vmem:[#allocation9] sm:$0xff]   ;;  %v2779_v61 = vld [vmem:[#allocation9 + $0x28] sm:$0xff]   ;;  %v2781_v60 = vld [vmem:[#allocation9 + $0x38] sm:$0xff]  }
 0x42e   : > { %2870 = vrsqrt.f32 %v1686_v30  ;;  %v1656_v33 = vsub.f32 %v1624_v59, %v1640_v10  ;;  %v1715_v9 = vmul.f32 %v2869_v15, %v1667_v1  ;;  %v1761_v18 = vadd.f32 %v3956_v17, %v1739_v31  ;;  %2631 = vmatprep.subr.bf16.mxu1 %v2774_v57  ;;  %v2776_v30 = vld [vmem:[#allocation9 + $0x10] sm:$0xff]   ;;  %v2777_v59 = vld [vmem:[#allocation9 + $0x18] sm:$0xff]   ;;  %v4031_v15 = vld [vmem:[%s4207_s10] ss:$0 sm:$0xff] }
 0x42f   : > { %2872 = vrsqrt.f32 %v1687_v56  ;;  %v1657_v39 = vsub.f32 %v1625_v38, %v1641_v28  ;;  %v1736_v45 = vmul.f32 %v3948_v42, %v1714_v62  ;;  %2632 = vmatpush3.bf16.msra.mxu1 %v2774_v57  ;;  %v2775_v28 = vld [vmem:[#allocation9 + $0x8] sm:$0xff]  }
 0x430   : > { %v1688_v19 = vadd.f32 1e-06, %v1656_v33  ;;  %v1737_v5 = vmul.f32 %v3948_v42, %v1715_v9  ;;  %v1771_v13 = vpack.c.bf16 %v1761_v18, %v1760_v43  ;;  %2633 = vmatprep.subr.bf16.mxu1 %v2775_v28 }
 0x431   : > { %v1689_v14 = vadd.f32 1e-06, %v1657_v39  ;;  %v1758_v26 = vadd.f32 %v3956_v17, %v1736_v45 }
 0x432   : > { %2874 = vrsqrt.f32 %v1688_v19  ;;  %v1759_v34 = vadd.f32 %v3956_v17, %v1737_v5 }
 0x433   : > { %2876 = vrsqrt.f32 %v1689_v14  ;;  %2634 = vmatpush3.bf16.msra.mxu1 %v2775_v28 }
 0x434   : > { %v1770_v20 = vpack.c.bf16 %v1759_v34, %v1758_v26  ;;  %2635 = vmatprep.subr.bf16.mxu1 %v2776_v30 }
 0x436   : > { %2623 = vmatprep.mubr.bf16.mxu0 %v1770_v20 }
 0x437   : > { %2624 = vmatmul.mubr.bf16.gmra.mrb[24].mxu0 %v1771_v13  ;;  %2636 = vmatpush3.bf16.msra.mxu1 %v2776_v30 }
 0x438   : > { %v2871_v36 = vpop.eup %2870  ;;  %2637 = vmatprep.subr.bf16.mxu1 %v2777_v59 }
 0x439   : > { %v2873_v41 = vpop.eup %2872  ;;  %v1718_v63 = vmul.f32 %v2871_v36, %v1670_v40 }
 0x43a   : > { %v1719_v35 = vmul.f32 %v2873_v41, %v1671_v7 }
 0x43b   : > { %v1740_v37 = vmul.f32 %v3948_v42, %v1718_v63  ;;  %2638 = vmatpush3.bf16.msra.mxu1 %v2777_v59 }
 0x43c   : > { %v2875_v24 = vpop.eup %2874  ;;  %v1741_v25 = vmul.f32 %v3948_v42, %v1719_v35 }
 0x43d   : > { %v2877_v8 = vpop.eup %2876  ;;  %v1762_v32 = vadd.f32 %v3956_v17, %v1740_v37  ;;  %v1720_v52 = vmul.f32 %v2875_v24, %v1672_v3 }
 0x43e   : > { %v1763_v11 = vadd.f32 %v3956_v17, %v1741_v25  ;;  %v1721_v21 = vmul.f32 %v2877_v8, %v1673_v46 }
 0x43f   : > { %v1742_v1 = vmul.f32 %v3948_v42, %v1720_v52 }
 0x440   : > { %v1772_v10 = vpack.c.bf16 %v1763_v11, %v1762_v32  ;;  %v1743_v6 = vmul.f32 %v3948_v42, %v1721_v21  ;;  %v2778_v42 = vld [vmem:[#allocation9 + $0x20] sm:$0xff]  }
 0x441   : > { %v1764_v2 = vadd.f32 %v3956_v17, %v1742_v1  ;;  %2639 = vmatprep.subr.bf16.mxu1 %v2778_v42 }
 0x442   : > { %2627 = vmatprep.mubr.bf16.mxu0 %v1772_v10  ;;  %v1765_v48 = vadd.f32 %v3956_v17, %v1743_v6  ;;  %2640 = vmatpush3.bf16.msra.mxu1 %v2778_v42  ;;  %v2780_v17 = vld [vmem:[#allocation9 + $0x30] sm:$0xff]  }
 0x443   : > { %2641 = vmatprep.subr.bf16.mxu1 %v2779_v61 }
 0x444   : > { %v1773_v54 = vpack.c.bf16 %v1765_v48, %v1764_v2 }
 0x446   : > { %2628 = vmatmul.mubr.bf16.gmra.mrb[28].mxu0 %v1773_v54  ;;  %2642 = vmatpush3.bf16.msra.mxu1 %v2779_v61 }
 0x447   : > { %2643 = vmatprep.subr.bf16.mxu1 %v2780_v17 }
 0x44a   : > { %2644 = vmatpush3.bf16.msra.mxu1 %v2780_v17 }
 0x44b   : > { %2645 = vmatprep.subr.bf16.mxu1 %v2781_v60 }
 0x44e   : > { %2646 = vmatpush3.bf16.msra.mxu1 %v2781_v60 }
 0x4ea   : > { %v2617_v56 = vpop.f32.mrb[16].mxu0 }
 0x4eb   : > { %v1888_v38 = vadd.f32 %v2617_v56, %v4031_v15  ;;  %v1879_v62 = vpop.f32.mrb[17].mxu0 }
 0x4ec   : > { %v1880_v31 = vadd.f32 %v4031_v15, %v1879_v62  ;;  %v2618_v33 = vpop.f32.mrb[18].mxu0 }
 0x4ed   : > { %v1960_v9 = vmul.f32 %v1888_v38, %v1888_v38  ;;  %v1891_v39 = vadd.f32 %v2618_v33, %v4031_v15  ;;  %v1882_v45 = vpop.f32.mrb[19].mxu0  ;;  %v1944_v60 = vmul.f32 0.5, %v1888_v38 }
 0x4ee   : > { %v1958_v19 = vmul.f32 %v1880_v31, %v1880_v31  ;;  %v1883_v5 = vadd.f32 %v4031_v15, %v1882_v45 }
 0x4ef   : > { %v1976_v14 = vmul.f32 %v1960_v9, %v1888_v38  ;;  %v1961_v26 = vmul.f32 %v1891_v39, %v1891_v39 }
 0x4f0   : > { %v1974_v43 = vmul.f32 %v1958_v19, %v1880_v31  ;;  %v1959_v18 = vmul.f32 %v1883_v5, %v1883_v5 }
 0x4f1   : > { %v1992_v34 = vmul.f32 0.044715, %v1976_v14  ;;  %v1977_v20 = vmul.f32 %v1961_v26, %v1891_v39  ;;  %v1942_v14 = vmul.f32 0.5, %v1880_v31 }
 0x4f2   : > { %v1990_v13 = vmul.f32 0.044715, %v1974_v43  ;;  %v1975_v40 = vmul.f32 %v1959_v18, %v1883_v5  ;;  %v1945_v18 = vmul.f32 0.5, %v1891_v39 }
 0x4f3   : > { %v2008_v36 = vadd.f32 %v1992_v34, %v1888_v38  ;;  %v1993_v7 = vmul.f32 0.044715, %v1977_v20  ;;  %v1943_v38 = vmul.f32 0.5, %v1883_v5 }
 0x4f4   : > { %v2006_v41 = vadd.f32 %v1990_v13, %v1880_v31  ;;  %v1991_v63 = vmul.f32 0.044715, %v1975_v40 }
 0x4f5   : > { %v2024_v35 = vmul.f32 0.7978846, %v2008_v36  ;;  %v2009_v3 = vadd.f32 %v1993_v7, %v1891_v39 }
 0x4f6   : > { %v2022_v37 = vmul.f32 0.7978846, %v2006_v41  ;;  %v2007_v24 = vadd.f32 %v1991_v63, %v1883_v5 }
 0x4f7   : > { %2878 = vtanh.f32 %v2024_v35  ;;  %v2025_v46 = vmul.f32 0.7978846, %v2009_v3 }
 0x4f8   : > { %2880 = vtanh.f32 %v2022_v37  ;;  %v2023_v25 = vmul.f32 0.7978846, %v2007_v24 }
 0x4f9   : > { %2882 = vtanh.f32 %v2025_v46 }
 0x4fa   : > { %2884 = vtanh.f32 %v2023_v25  ;;  %v2621_v8 = vpop.f32.mrb[20].mxu0 }
 0x4fb   : > { %v4038_v32 = vadd.f32 %v2621_v8, %v4031_v15  ;;  %v1895_v52 = vpop.f32.mrb[21].mxu0 }
 0x4fc   : > { %v4041_v11 = vadd.f32 %v4031_v15, %v1895_v52  ;;  %v2622_v21 = vpop.f32.mrb[22].mxu0 }
 0x4fd   : > { %v1964_v1 = vmul.f32 %v4038_v32, %v4038_v32  ;;  %v4046_v10 = vadd.f32 %v2622_v21, %v4031_v15  ;;  %v1898_v6 = vpop.f32.mrb[23].mxu0 }
 0x4fe   : > { %v1962_v2 = vmul.f32 %v4041_v11, %v4041_v11  ;;  %v4051_v48 = vadd.f32 %v4031_v15, %v1898_v6 }
 0x4ff   : > { %v1980_v54 = vmul.f32 %v1964_v1, %v4038_v32  ;;  %v1965_v57 = vmul.f32 %v4046_v10, %v4046_v10 }
 0x500   : > { %v1978_v28 = vmul.f32 %v1962_v2, %v4041_v11  ;;  %v1963_v30 = vmul.f32 %v4051_v48, %v4051_v48 }
 0x501   : > { %v2879_v59 = vpop.eup %2878  ;;  %v1996_v42 = vmul.f32 0.044715, %v1980_v54  ;;  %v1981_v61 = vmul.f32 %v1965_v57, %v4046_v10 }
 0x502   : > { %v2881_v17 = vpop.eup %2880  ;;  %v2056_v56 = vadd.f32 1.0, %v2879_v59  ;;  %v1994_v62 = vmul.f32 0.044715, %v1978_v28  ;;  %v1979_v33 = vmul.f32 %v1963_v30, %v4051_v48 }
 0x503   : > { %v2883_v9 = vpop.eup %2882  ;;  %v2012_v45 = vadd.f32 %v1996_v42, %v4038_v32  ;;  %v1997_v19 = vmul.f32 0.044715, %v1981_v61  ;;  %v2054_v26 = vadd.f32 1.0, %v2881_v17 }
 0x504   : > { %v2885_v43 = vpop.eup %2884  ;;  %v2057_v34 = vadd.f32 1.0, %v2883_v9  ;;  %v2010_v20 = vadd.f32 %v1994_v62, %v4041_v11  ;;  %v1995_v13 = vmul.f32 0.044715, %v1979_v33  ;;  %v2072_v41 = vmul.f32 %v2056_v56, %v1944_v60 }
 0x505   : > { %v2028_v40 = vmul.f32 0.7978846, %v2012_v45  ;;  %v2013_v36 = vadd.f32 %v1997_v19, %v4046_v10  ;;  %v2055_v7 = vadd.f32 1.0, %v2885_v43  ;;  %v2070_v31 = vmul.f32 %v2054_v26, %v1942_v14 }
 0x506   : > { %v2073_v63 = vmul.f32 %v2057_v34, %v1945_v18  ;;  %v2026_v35 = vmul.f32 0.7978846, %v2010_v20  ;;  %v2011_v3 = vadd.f32 %v1995_v13, %v4051_v48  ;;  %v1948_v45 = vmul.f32 0.5, %v4038_v32 }
 0x507   : > { %2886 = vtanh.f32 %v2028_v40  ;;  %v2029_v37 = vmul.f32 0.7978846, %v2013_v36  ;;  %v2071_v24 = vmul.f32 %v2055_v7, %v1943_v38  ;;  %v1946_v18 = vmul.f32 0.5, %v4041_v11 }
 0x508   : > { %2888 = vtanh.f32 %v2026_v35  ;;  %v2027_v39 = vmul.f32 0.7978846, %v2011_v3  ;;  %v2087_v46 = vpack.c.bf16 %v2073_v63, %v2072_v41  ;;  %v1949_v36 = vmul.f32 0.5, %v4046_v10 }
 0x509   : > { %2890 = vtanh.f32 %v2029_v37  ;;  %v2086_v25 = vpack.c.bf16 %v2071_v24, %v2070_v31  ;;  %v1947_v32 = vmul.f32 0.5, %v4051_v48 }
 0x50a   : > { %2892 = vtanh.f32 %v2027_v39  ;;  %v2625_v8 = vpop.f32.mrb[24].mxu0 }
 0x50b   : > { %v4066_v52 = vadd.f32 %v2625_v8, %v4031_v15  ;;  %v1911_v5 = vpop.f32.mrb[25].mxu0  ;;  %2647 = vmatprep.mubr.bf16.mxu1 %v2086_v25 }
 0x50c   : > { %v4069_v21 = vadd.f32 %v4031_v15, %v1911_v5  ;;  %v2626_v1 = vpop.f32.mrb[26].mxu0  ;;  %2648 = vmatmul.mubr.bf16.vlgmr.msra.gmra.mrb[16].mxu1 %v2087_v46 }
 0x50d   : > { %v1968_v6 = vmul.f32 %v4066_v52, %v4066_v52  ;;  %v4074_v2 = vadd.f32 %v2626_v1, %v4031_v15  ;;  %v1914_v54 = vpop.f32.mrb[27].mxu0 }
 0x50e   : > { %v1966_v57 = vmul.f32 %v4069_v21, %v4069_v21  ;;  %v4079_v28 = vadd.f32 %v4031_v15, %v1914_v54 }
 0x50f   : > { %v1984_v30 = vmul.f32 %v1968_v6, %v4066_v52  ;;  %v1969_v59 = vmul.f32 %v4074_v2, %v4074_v2 }
 0x510   : > { %v1982_v42 = vmul.f32 %v1966_v57, %v4069_v21  ;;  %v1967_v61 = vmul.f32 %v4079_v28, %v4079_v28 }
 0x511   : > { %v2887_v17 = vpop.eup %2886  ;;  %v2000_v60 = vmul.f32 0.044715, %v1984_v30  ;;  %v1985_v56 = vmul.f32 %v1969_v59, %v4074_v2 }
 0x512   : > { %v2889_v62 = vpop.eup %2888  ;;  %v1998_v33 = vmul.f32 0.044715, %v1982_v42  ;;  %v1983_v9 = vmul.f32 %v1967_v61, %v4079_v28  ;;  %v2060_v19 = vadd.f32 1.0, %v2887_v17 }
 0x513   : > { %v2891_v14 = vpop.eup %2890  ;;  %v2016_v26 = vadd.f32 %v2000_v60, %v4066_v52  ;;  %v2001_v43 = vmul.f32 0.044715, %v1985_v56  ;;  %v2058_v34 = vadd.f32 1.0, %v2889_v62 }
 0x514   : > { %v2893_v20 = vpop.eup %2892  ;;  %v2014_v13 = vadd.f32 %v1998_v33, %v4069_v21  ;;  %v1999_v40 = vmul.f32 0.044715, %v1983_v9  ;;  %v2061_v38 = vadd.f32 1.0, %v2891_v14  ;;  %v2076_v37 = vmul.f32 %v2060_v19, %v1948_v45 }
 0x515   : > { %v2032_v7 = vmul.f32 0.7978846, %v2016_v26  ;;  %v2017_v41 = vadd.f32 %v2001_v43, %v4074_v2  ;;  %v2059_v63 = vadd.f32 1.0, %v2893_v20  ;;  %v2074_v24 = vmul.f32 %v2058_v34, %v1946_v18 }
 0x516   : > { %v2030_v35 = vmul.f32 0.7978846, %v2014_v13  ;;  %v2015_v3 = vadd.f32 %v1999_v40, %v4079_v28  ;;  %v2077_v31 = vmul.f32 %v2061_v38, %v1949_v36  ;;  %v1952_v18 = vmul.f32 0.5, %v4066_v52 }
 0x517   : > { %2894 = vtanh.f32 %v2032_v7  ;;  %v2033_v11 = vmul.f32 0.7978846, %v2017_v41  ;;  %v2075_v39 = vmul.f32 %v2059_v63, %v1947_v32  ;;  %v1953_v32 = vmul.f32 0.5, %v4074_v2 }
 0x518   : > { %2896 = vtanh.f32 %v2030_v35  ;;  %v2031_v46 = vmul.f32 0.7978846, %v2015_v3  ;;  %v2089_v25 = vpack.c.bf16 %v2077_v31, %v2076_v37  ;;  %v1951_v37 = vmul.f32 0.5, %v4079_v28 }
 0x519   : > { %2898 = vtanh.f32 %v2033_v11  ;;  %v2629_v10 = vpop.f32.mrb[28].mxu0  ;;  %v2088_v8 = vpack.c.bf16 %v2075_v39, %v2074_v24 }
 0x51a   : > { %2900 = vtanh.f32 %v2031_v46  ;;  %v1936_v5 = vadd.f32 %v2629_v10, %v4031_v15  ;;  %v1927_v48 = vpop.f32.mrb[29].mxu0 }
 0x51b   : > { %v1928_v1 = vadd.f32 %v4031_v15, %v1927_v48  ;;  %v2630_v6 = vpop.f32.mrb[30].mxu0  ;;  %2651 = vmatprep.mubr.bf16.mxu1 %v2088_v8 }
 0x51c   : > { %v1972_v54 = vmul.f32 %v1936_v5, %v1936_v5  ;;  %v1939_v57 = vadd.f32 %v2630_v6, %v4031_v15  ;;  %v1930_v30 = vpop.f32.mrb[31].mxu0  ;;  %2652 = vmatmul.mubr.bf16.gmra.mrb[20].mxu1 %v2089_v25 }
 0x51d   : > { %v1970_v59 = vmul.f32 %v1928_v1, %v1928_v1  ;;  %v1931_v42 = vadd.f32 %v4031_v15, %v1930_v30  ;;  %v1950_v15 = vmul.f32 0.5, %v4069_v21  ;;  %v1956_v30 = vmul.f32 0.5, %v1936_v5 }
 0x51e   : > { %v1988_v61 = vmul.f32 %v1972_v54, %v1936_v5  ;;  %v1973_v17 = vmul.f32 %v1939_v57, %v1939_v57 }
 0x51f   : > { %v1986_v60 = vmul.f32 %v1970_v59, %v1928_v1  ;;  %v1971_v56 = vmul.f32 %v1931_v42, %v1931_v42  ;;  %v1957_v59 = vmul.f32 0.5, %v1939_v57 }
 0x520   : > { %v2004_v62 = vmul.f32 0.044715, %v1988_v61  ;;  %v1989_v33 = vmul.f32 %v1973_v17, %v1939_v57  ;;  %v1954_v17 = vmul.f32 0.5, %v1928_v1 }
 0x521   : > { %v2895_v9 = vpop.eup %2894  ;;  %v2002_v45 = vmul.f32 0.044715, %v1986_v60  ;;  %v1987_v19 = vmul.f32 %v1971_v56, %v1931_v42  ;;  %v1955_v60 = vmul.f32 0.5, %v1931_v42 }
 0x522   : > { %v2897_v14 = vpop.eup %2896  ;;  %v2020_v26 = vadd.f32 %v2004_v62, %v1936_v5  ;;  %v2005_v43 = vmul.f32 0.044715, %v1989_v33  ;;  %v2064_v34 = vadd.f32 1.0, %v2895_v9 }
 0x523   : > { %v2899_v20 = vpop.eup %2898  ;;  %v2018_v13 = vadd.f32 %v2002_v45, %v1928_v1  ;;  %v2003_v40 = vmul.f32 0.044715, %v1987_v19  ;;  %v2062_v36 = vadd.f32 1.0, %v2897_v14 }
 0x524   : > { %v2901_v38 = vpop.eup %2900  ;;  %v2036_v7 = vmul.f32 0.7978846, %v2020_v26  ;;  %v2021_v41 = vadd.f32 %v2005_v43, %v1939_v57  ;;  %v2065_v63 = vadd.f32 1.0, %v2899_v20  ;;  %v2080_v11 = vmul.f32 %v2064_v34, %v1952_v18  ;;  %v2455_v26 = vld [vmem:[%s4244_s25] ss:$0 sm:$0xff] }
 0x525   : > { %v2034_v35 = vmul.f32 0.7978846, %v2018_v13  ;;  %v2019_v3 = vadd.f32 %v2003_v40, %v1931_v42  ;;  %v2063_v31 = vadd.f32 1.0, %v2901_v38  ;;  %v2078_v46 = vmul.f32 %v2062_v36, %v1950_v15 }
 0x526   : > { %2902 = vtanh.f32 %v2036_v7  ;;  %v2037_v52 = vmul.f32 0.7978846, %v2021_v41  ;;  %v2081_v24 = vmul.f32 %v2065_v63, %v1953_v32 }
 0x527   : > { %2904 = vtanh.f32 %v2034_v35  ;;  %v2035_v39 = vmul.f32 0.7978846, %v2019_v3  ;;  %v2079_v21 = vmul.f32 %v2063_v31, %v1951_v37 }
 0x528   : > { %2906 = vtanh.f32 %v2037_v52  ;;  %v2091_v25 = vpack.c.bf16 %v2081_v24, %v2080_v11 }
 0x529   : > { %2908 = vtanh.f32 %v2035_v39  ;;  %v2090_v10 = vpack.c.bf16 %v2079_v21, %v2078_v46 }
 0x52b   : > { %2655 = vmatprep.mubr.bf16.mxu1 %v2090_v10 }
 0x52c   : > { %2656 = vmatmul.mubr.bf16.gmra.mrb[24].mxu1 %v2091_v25 }
 0x530   : > { %v2903_v2 = vpop.eup %2902 }
 0x531   : > { %v2905_v8 = vpop.eup %2904  ;;  %v2068_v48 = vadd.f32 1.0, %v2903_v2 }
 0x532   : > { %v2907_v6 = vpop.eup %2906  ;;  %v2066_v28 = vadd.f32 1.0, %v2905_v8 }
 0x533   : > { %v2909_v54 = vpop.eup %2908  ;;  %v2069_v61 = vadd.f32 1.0, %v2907_v6  ;;  %v2084_v62 = vmul.f32 %v2068_v48, %v1956_v30 }
 0x534   : > { %v2067_v56 = vadd.f32 1.0, %v2909_v54  ;;  %v2082_v9 = vmul.f32 %v2066_v28, %v1954_v17 }
 0x535   : > { %v2085_v33 = vmul.f32 %v2069_v61, %v1957_v59 }
 0x536   : > { %v2083_v45 = vmul.f32 %v2067_v56, %v1955_v60 }
 0x537   : > { %v2093_v19 = vpack.c.bf16 %v2085_v33, %v2084_v62 }
 0x538   : > { %v2092_v14 = vpack.c.bf16 %v2083_v45, %v2082_v9 }
 0x53a   : > { %2659 = vmatprep.mubr.bf16.mxu1 %v2092_v14 }
 0x53b   : > { %2660 = vmatmul.mubr.bf16.gmra.mrb[28].mxu1 %v2093_v19 }
 0x5df   : > { %v2649_v5 = vpop.f32.mrb[16].mxu1 }
 0x5e0   : > { %v2208_v57 = vadd.f32 %v2649_v5, %v2455_v26  ;;  %v2199_v1 = vpop.f32.mrb[17].mxu1 }
 0x5e1   : > { %v2200_v42 = vadd.f32 %v2455_v26, %v2199_v1  ;;  %v2650_v43 = vpop.f32.mrb[18].mxu1 }
 0x5e2   : > { %v2264_v18 = vadd.f32 %v2208_v57, %v3800_v47  ;;  %v2211_v34 = vadd.f32 %v2650_v43, %v2455_v26  ;;  %v2202_v20 = vpop.f32.mrb[19].mxu1 }
 0x5e3   : > { %v2262_v13 = vadd.f32 %v2200_v42, %v3805_v51  ;;  %v2203_v40 = vadd.f32 %v2455_v26, %v2202_v20 }
 0x5e4   : > { %2280 = vst [vmem:[%s4113_s23 + $0x10] sm:$0xff] %v2264_v18  ;;  %v2265_v15 = vadd.f32 %v2211_v34, %v3814_v53 }
 0x5e5   : > { %2278 = vst [vmem:[%s4113_s23] sm:$0xff] %v2262_v13  ;;  %v2263_v36 = vadd.f32 %v2203_v40, %v3820_v16 }
 0x5e6   : > { %2281 = vst [vmem:[%s4113_s23 + $0x18] sm:$0xff] %v2265_v15 }
 0x5e7   : > { %2279 = vst [vmem:[%s4113_s23 + $0x8] sm:$0xff] %v2263_v36 }
 0x5ef   : > { %v2653_v47 = vpop.f32.mrb[20].mxu1 }
 0x5f0   : > { %v2224_v51 = vadd.f32 %v2653_v47, %v2455_v26  ;;  %v2215_v38 = vpop.f32.mrb[21].mxu1 }
 0x5f1   : > { %v2216_v7 = vadd.f32 %v2455_v26, %v2215_v38  ;;  %v2654_v41 = vpop.f32.mrb[22].mxu1 }
 0x5f2   : > { %v2268_v32 = vadd.f32 %v2224_v51, %v3834_v22  ;;  %v2227_v63 = vadd.f32 %v2654_v41, %v2455_v26  ;;  %v2218_v35 = vpop.f32.mrb[23].mxu1 }
 0x5f3   : > { %v2266_v3 = vadd.f32 %v2216_v7, %v3846_v49  ;;  %v2219_v53 = vadd.f32 %v2455_v26, %v2218_v35 }
 0x5f4   : > { %2284 = vst [vmem:[%s4113_s23 + $0x30] sm:$0xff] %v2268_v32  ;;  %v2269_v16 = vadd.f32 %v2227_v63, %v3839_v27 }
 0x5f5   : > { %2282 = vst [vmem:[%s4113_s23 + $0x20] sm:$0xff] %v2266_v3  ;;  %v2267_v37 = vadd.f32 %v2219_v53, %v3849_v44 }
 0x5f6   : > { %2285 = vst [vmem:[%s4113_s23 + $0x38] sm:$0xff] %v2269_v16 }
 0x5f7   : > { %2283 = vst [vmem:[%s4113_s23 + $0x28] sm:$0xff] %v2267_v37 }
 0x5ff   : > { %v2657_v31 = vpop.f32.mrb[24].mxu1 }
 0x600   : > { %v2240_v52 = vadd.f32 %v2657_v31, %v2455_v26  ;;  %v2231_v22 = vpop.f32.mrb[25].mxu1 }
 0x601   : > { %v2232_v11 = vadd.f32 %v2455_v26, %v2231_v22  ;;  %v2658_v24 = vpop.f32.mrb[26].mxu1 }
 0x602   : > { %v2272_v49 = vadd.f32 %v2240_v52, %v3866_v29  ;;  %v2243_v39 = vadd.f32 %v2658_v24, %v2455_v26  ;;  %v2234_v46 = vpop.f32.mrb[27].mxu1 }
 0x603   : > { %v2270_v27 = vadd.f32 %v2232_v11, %v3878_v50  ;;  %v2235_v21 = vadd.f32 %v2455_v26, %v2234_v46 }
 0x604   : > { %2288 = vst [vmem:[%s4113_s23 + $0x50] sm:$0xff] %v2272_v49  ;;  %v2273_v44 = vadd.f32 %v2243_v39, %v3871_v12 }
 0x605   : > { %2286 = vst [vmem:[%s4113_s23 + $0x40] sm:$0xff] %v2270_v27  ;;  %v2271_v25 = vadd.f32 %v2235_v21, %v3881_v55 }
 0x606   : > { %2289 = vst [vmem:[%s4113_s23 + $0x58] sm:$0xff] %v2273_v44 }
 0x607   : > { %2287 = vst [vmem:[%s4113_s23 + $0x48] sm:$0xff] %v2271_v25 }
 0x60e   : > { %v2661_v10 = vpop.f32.mrb[28].mxu1 }
 0x60f   : > { %v2256_v2 = vadd.f32 %v2661_v10, %v2455_v26  ;;  %v2247_v29 = vpop.f32.mrb[29].mxu1 }
 0x610   : > { %v2248_v8 = vadd.f32 %v2455_v26, %v2247_v29  ;;  %v2662_v48 = vpop.f32.mrb[30].mxu1 }
 0x611   : > { %v2276_v50 = vadd.f32 %v2256_v2, %v3898_v0  ;;  %v2259_v12 = vadd.f32 %v2662_v48, %v2455_v26  ;;  %v2250_v6 = vpop.f32.mrb[31].mxu1 }
 0x612   : > { %v2274_v55 = vadd.f32 %v2248_v8, %v3910_v4  ;;  %v2251_v28 = vadd.f32 %v2455_v26, %v2250_v6 }
 0x613   : > { %2292 = vst [vmem:[%s4113_s23 + $0x70] sm:$0xff] %v2276_v50  ;;  %v2277_v54 = vadd.f32 %v2259_v12, %v3903_v23 }
 0x614   : > { %2290 = vst [vmem:[%s4113_s23 + $0x60] sm:$0xff] %v2274_v55  ;;  %v2275_v0 = vadd.f32 %v2251_v28, %v3913_v58 }
 0x615   : > { %2293 = vst [vmem:[%s4113_s23 + $0x78] sm:$0xff] %v2277_v54 }
 0x616   : > { %2291 = vst [vmem:[%s4113_s23 + $0x68] sm:$0xff] %v2275_v0 }
 0x617   : > { %3051 = shalt.err (!%p3048_p0)
}
 0x618   : > { %s3052_s16 = scalar_lea.hbm %s4146_s21, 2048  ;;  %s3056_s25 = scalar_lea.hbm %s4246_s14, 4096 }
 0x619   : > { %p3053_p10 = scmp.ne.s32.totalorder %s4146_s21, %s3052_s16  ;;  %p3057_p4 = scmp.lt.u32.totalorder %s4146_s21, %s4246_s14 }
 0x61a   : > { %p3058_p12 = scmp.lt.u32.totalorder %s3056_s25, %s3052_s16  ;;  %p3060_p8 = scmp.lt.u32.totalorder %s3052_s16, %s4146_s21 }
 0x61b   : > { %p3054_p2 = pnand %p3053_p10, %p4247_p11 }
 0x61c   : > { %p3059_p7 = por %p3058_p12, %p3057_p4 }
 0x61d   : > { %p3055_p3 = pneg %p3054_p2 }
 0x61e   : > { %p3061_p13 = por %p3060_p8, %p3059_p7 }
 0x620   : > { %p3062_p1 = pnand %p3061_p13, %p3055_p3 }
 0x622   : > { %3065 = shalt.err (!%p3062_p1)
}
 0x623   : > { %s3122_s17 = smov 128   ;;  %s3123_s18 = smov 8  }
 0x624   : > { %2679 = dma.vmem_to_hbm [thread:$0]  (%p4247_p11), %s4148_s13, 2048, %s4146_s21, %s4156_s29, %s3122_s17, %s3122_s17, %s3123_s18  }
 0x625 PF: > { %s4248_s19 = sld [smem:[#allocation18_spill]]  ;;  %s4249_s24 = sld [smem:[#allocation16_spill]] }
 0x626   : > { %s4250_s15 = sld [smem:[#allocation22_spill]] }
 0x62b   : > { %p2706_p6 = scmp.ge.s32.totalorder %s4248_s19, 2  ;;  %s2323_s27 = sand.u32 1, %s4249_s24  }
 0x62c   : > { %p4251_p9 = scmp.ne.s32.totalorder %s4250_s15, 0  ;;  %s2324_s22 = scalar_lea.sflag [#allocation5], %s2323_s27 }
 0x62e   : > { %p2695_p5 = pnand %p2706_p6, %p4251_p9 }
 0x630   : > { %3095 = dma.done.wait (!%p2695_p5), %s2324_s22, 2048  }
 0x631   : > { %3097 = vsyncadd (!%p2695_p5), %s2324_s22, 4294965248  ;;  %s4252_s28 = sld [smem:[#allocation19_spill]]  ;;  %s4253_s16 = sld [smem:[#allocation17_spill]] }
 0x632   : > { %s4254_s27 = sld [smem:[#allocation20_spill]]  ;;  %s4255_s25 = smov %s3104_s26 }
 0x637   : > { %p26_p0 = scmp.ge.s32.totalorder %s4252_s28, 4   ;;  %s4256_s26 = smov %s4253_s16 }
 0x639   :  { %28 = sbr.rel (!%p26_p0) target bundleno = 9 (0x9), region = 124 }
 0x640   :  { %2329 = vsyncpa [#allocation4], 1 }
 0x641   :  { %2331 = vsyncpa [#allocation4 + $0x1], 1 }
 0x642   :  { %2332 = vsyncpa [#allocation7], 1 }
 0x643   :  { %2333 = vsyncpa [#allocation10], 1 }
 0x644   :  { %2334 = vsyncpa [#allocation5], 1 }
 0x645   :  { %2336 = vsyncpa [#allocation5 + $0x1], 1 }

</bundles_post_ra>
